<compile_context>
chip_gen: v7x
topology: tpu7x:2x2x1
jax: 0.10.0
libtpu: 0.0.40
codegen_flags: <defaults>
</compile_context>

<pallas_src>
import functools

import jax
import jax.numpy as jnp
import numpy as np
from jax.experimental import pallas as pl
from jax.experimental.pallas import tpu as pltpu

LRELU_SLOPE = 0.2
_VMEM_LIMIT_BYTES = 32 * 1024 * 1024


# ---------------------------------------------------------------------------
# Pallas kernels
# ---------------------------------------------------------------------------
def gan_loss_d_kernel(alpha_ref, pred_ref, target_ref, w1_ref, w1t_ref,
                      b1_ref, w2_ref, b2_ref,
                      adv_ref, gp_ref,
                      hp_ref, ht_ref, gh_ref, ssq_ref, *, inv_b):
    """Phase 'D': adversarial D loss + gradient penalty.

    grid = (2, nF):
      pass p=0: stream pred/target/w1 F-tiles, accumulate hidden pre-acts.
      pass p=1: stream w1^T F-tiles, accumulate ||dD/dx_interp||_F^2.
    """
    p = pl.program_id(0)
    k = pl.program_id(1)
    nk = pl.num_programs(1)

    @pl.when(jnp.logical_and(p == 0, k == 0))
    def _init():
        hp_ref[...] = jnp.zeros_like(hp_ref)
        ht_ref[...] = jnp.zeros_like(ht_ref)
        ssq_ref[...] = jnp.zeros_like(ssq_ref)

    @pl.when(p == 0)
    def _fwd_step():
        w1_t = w1_ref[...].astype(jnp.float32)                      # (tF, Hp)
        hp_ref[...] += jnp.dot(pred_ref[...], w1_t,
                               preferred_element_type=jnp.float32)
        ht_ref[...] += jnp.dot(target_ref[...], w1_t,
                               preferred_element_type=jnp.float32)

    @pl.when(jnp.logical_and(p == 0, k == nk - 1))
    def _fwd_finalize():
        b1 = b1_ref[...]                                            # (1, Hp)
        w2 = w2_ref[...]                                            # (1, Hp)
        b2 = b2_ref[...]                                            # (1, 1)
        hp = hp_ref[...] + b1
        ht = ht_ref[...] + b1
        ap = jnp.where(hp > 0, hp, LRELU_SLOPE * hp)
        at = jnp.where(ht > 0, ht, LRELU_SLOPE * ht)
        # N=1 score contraction on the VPU/XLU, not a 1-column MXU matmul.
        sp = jnp.sum(ap * w2, axis=1, keepdims=True) + b2           # (B, 1)
        st = jnp.sum(at * w2, axis=1, keepdims=True) + b2           # (B, 1)
        # adv_D_loss = -mean(D(target)) + mean(D(pred.detach()))
        adv_ref[...] = (jnp.sum(sp, axis=0, keepdims=True)
                        - jnp.sum(st, axis=0, keepdims=True)) * inv_b
        # interp hidden state by linearity: (a*x + (1-a)*y) @ W1 + b1
        #   == a*(x@W1 + b1) + (1-a)*(y@W1 + b1)  (exact)
        alpha = alpha_ref[...]                                      # (B, 1)
        hi = alpha * hp + (1.0 - alpha) * ht
        dact = jnp.where(hi > 0, 1.0, LRELU_SLOPE)
        gh_ref[...] = dact * w2                                     # (B, Hp)

    @pl.when(p == 1)
    def _grad_step():
        # grad tile = g_h @ W1^T[:, tile]; accumulate Frobenius sum of squares
        g = jnp.dot(gh_ref[...], w1t_ref[...].astype(jnp.float32),
                    preferred_element_type=jnp.float32)             # (B, tF)
        ssq_ref[...] += jnp.sum(jnp.sum(g * g, axis=1, keepdims=True),
                                axis=0, keepdims=True)

    @pl.when(jnp.logical_and(p == 1, k == nk - 1))
    def _grad_finalize():
        # gp_loss = mean((||grad||_F - 1)^2); torch.norm with no dim is the
        # Frobenius norm over the whole (B, F) matrix, so mean() is a no-op.
        gp_ref[...] = (jnp.sqrt(ssq_ref[...]) - 1.0) ** 2


def gan_loss_g_kernel(pred_ref, target_ref, w1_ref, b1_ref, w2_ref, b2_ref,
                      adv_ref, pixel_ref, h_ref, pix_ref,
                      *, use_l1, inv_b, inv_bf):
    """Phase 'G': adversarial G loss + pixel loss (L1 or MSE), F-tiled."""
    k = pl.program_id(0)
    nk = pl.num_programs(0)

    @pl.when(k == 0)
    def _init():
        h_ref[...] = jnp.zeros_like(h_ref)
        pix_ref[...] = jnp.zeros_like(pix_ref)

    pred = pred_ref[...]                                            # (B, tF)
    target = target_ref[...]                                        # (B, tF)
    h_ref[...] += jnp.dot(pred, w1_ref[...].astype(jnp.float32),
                          preferred_element_type=jnp.float32)
    diff = pred - target
    per_elem = jnp.abs(diff) if use_l1 else diff * diff
    pix_ref[...] += jnp.sum(jnp.sum(per_elem, axis=1, keepdims=True),
                            axis=0, keepdims=True)

    @pl.when(k == nk - 1)
    def _finalize():
        h = h_ref[...] + b1_ref[...]
        a = jnp.where(h > 0, h, LRELU_SLOPE * h)
        s = jnp.sum(a * w2_ref[...], axis=1, keepdims=True) + b2_ref[...]
        adv_ref[...] = -jnp.sum(s, axis=0, keepdims=True) * inv_b
        pixel_ref[...] = pix_ref[...] * inv_bf   # divide by true B*F


# ---------------------------------------------------------------------------
# Wrapper
# ---------------------------------------------------------------------------
def _round_up(x, m):
    return -(-x // m) * m


def _choose_tile_f(fp):
    # Modest F tiles keep 2x-buffered (B,tF)+(tF,128)+(128,tF) blocks far
    # below the scoped VMEM limit on every generation (incl. v7x 64 MiB).
    for t in (512, 256, 128):
        if fp % t == 0:
            return t
    return 128


def _pad2d(x, shape):
    pads = [(0, s - d) for d, s in zip(x.shape, shape)]
    if any(p[1] for p in pads):
        x = jnp.pad(x, pads)
    return x


def gan_loss_forward(phase, disc_params, pred_nchw, target_nchw, epoch_id,
                     epochs, alpha=None):
    """Mirrors GanLoss.forward. Returns (adv_loss, second_loss, third)."""
    w1, b1, w2, b2 = disc_params
    B = pred_nchw.shape[0]
    F = int(np.prod(pred_nchw.shape[1:]))
    HID = w1.shape[1]

    Hp = max(128, _round_up(HID, 128))          # lane-dense hidden dim
    Fp = _round_up(F, 128)
    tF = _choose_tile_f(Fp)
    nF = Fp // tF

    # Zero padding is loss-neutral: padded F rows of w1/w1^T and padded hidden
    # columns contribute exactly 0 to scores, gradient and pixel sums.
    pred = _pad2d(pred_nchw.reshape(B, F).astype(jnp.float32), (B, Fp))
    target = _pad2d(target_nchw.reshape(B, F).astype(jnp.float32), (B, Fp))
    w1p = _pad2d(w1.astype(jnp.float32), (Fp, Hp)).astype(jnp.bfloat16)
    b1p = _pad2d(b1.reshape(1, -1).astype(jnp.float32), (1, Hp))
    w2p = _pad2d(w2.reshape(1, -1).astype(jnp.float32), (1, Hp))
    b2p = b2.reshape(1, 1).astype(jnp.float32)

    scalar_out = jax.ShapeDtypeStruct((1, 1), jnp.float32)

    if phase == 'D':
        alpha2d = alpha.reshape(B, 1).astype(jnp.float32)   # torch.rand(B,1,1,1)
        w1t = jnp.transpose(w1p)                            # (Hp, Fp) bf16

        # Pass 0 walks F-tiles in reverse so the transition into pass 1 does
        # not re-DMA block 0; during the pass where an input is unused its
        # block index is constant, so no redundant HBM traffic is issued.
        def fwd_idx(p, k):
            return (nF - 1 - k) * (1 - p)

        scalar_spec = pl.BlockSpec((1, 1), lambda p, k: (0, 0))
        in_specs = [
            pl.BlockSpec((B, 1), lambda p, k: (0, 0)),                # alpha
            pl.BlockSpec((B, tF), lambda p, k: (0, fwd_idx(p, k))),   # pred
            pl.BlockSpec((B, tF), lambda p, k: (0, fwd_idx(p, k))),   # target
            pl.BlockSpec((tF, Hp), lambda p, k: (fwd_idx(p, k), 0)),  # w1
            pl.BlockSpec((Hp, tF), lambda p, k: (0, k * p)),          # w1^T
            pl.BlockSpec((1, Hp), lambda p, k: (0, 0)),               # b1
            pl.BlockSpec((1, Hp), lambda p, k: (0, 0)),               # w2
            pl.BlockSpec((1, 1), lambda p, k: (0, 0)),                # b2
        ]
        grid_spec = pltpu.PrefetchScalarGridSpec(
            num_scalar_prefetch=0,
            grid=(2, nF),
            in_specs=in_specs,
            out_specs=[scalar_spec, scalar_spec],
            scratch_shapes=[pltpu.VMEM((B, Hp), jnp.float32),   # h_pred acc
                            pltpu.VMEM((B, Hp), jnp.float32),   # h_target acc
                            pltpu.VMEM((B, Hp), jnp.float32),   # g_h
                            pltpu.VMEM((1, 1), jnp.float32)])   # sumsq acc
        adv, gp = pl.pallas_call(
            functools.partial(gan_loss_d_kernel, inv_b=1.0 / B),
            out_shape=(scalar_out, scalar_out),
            grid_spec=grid_spec,
            compiler_params=pltpu.CompilerParams(
                dimension_semantics=("arbitrary", "arbitrary"),
                vmem_limit_bytes=_VMEM_LIMIT_BYTES),
        )(alpha2d, pred, target, w1p, w1t, b1p, w2p, b2p)
        return adv[0, 0], gp[0, 0], None
    else:
        # Python-level branch like torch (recompiles once when the epoch
        # crosses epochs // 4; both variants end up cached).
        use_l1 = bool(epoch_id < epochs // 4)
        scalar_spec = pl.BlockSpec((1, 1), lambda k: (0, 0))
        in_specs = [
            pl.BlockSpec((B, tF), lambda k: (0, k)),                  # pred
            pl.BlockSpec((B, tF), lambda k: (0, k)),                  # target
            pl.BlockSpec((tF, Hp), lambda k: (k, 0)),                 # w1
            pl.BlockSpec((1, Hp), lambda k: (0, 0)),                  # b1
            pl.BlockSpec((1, Hp), lambda k: (0, 0)),                  # w2
            pl.BlockSpec((1, 1), lambda k: (0, 0)),                   # b2
        ]
        grid_spec = pltpu.PrefetchScalarGridSpec(
            num_scalar_prefetch=0,
            grid=(nF,),
            in_specs=in_specs,
            out_specs=[scalar_spec, scalar_spec],
            scratch_shapes=[pltpu.VMEM((B, Hp), jnp.float32),   # hidden acc
                            pltpu.VMEM((1, 1), jnp.float32)])   # pixel acc
        adv, pixel = pl.pallas_call(
            functools.partial(gan_loss_g_kernel, use_l1=use_l1,
                              inv_b=1.0 / B, inv_bf=1.0 / (B * F)),
            out_shape=(scalar_out, scalar_out),
            grid_spec=grid_spec,
            compiler_params=pltpu.CompilerParams(
                dimension_semantics=("arbitrary",),
                vmem_limit_bytes=_VMEM_LIMIT_BYTES),
        )(pred, target, w1p, b1p, w2p, b2p)
        # TODO(synk): perceptual_loss path (pretrained resnet34 features) not
        # translated; args.perceptual_loss=False so it is the constant 0.
        perceptual_loss = 0
        return adv[0, 0], pixel[0, 0], perceptual_loss


# ---------------------------------------------------------------------------
# Pure-JAX reference (for correctness check only)
# ---------------------------------------------------------------------------
def _disc_ref(x, params):
    w1, b1, w2, b2 = params
    h = x @ w1 + b1
    a = jnp.where(h > 0, h, LRELU_SLOPE * h)
    return a @ w2.T + b2


if __name__ == "__main__":
    B, C, H, W = 2, 4, 16, 16
    F = C * H * W
    HID = 32
    EPOCHS = 40

    key = jax.random.PRNGKey(0)
    k_pred, k_tgt, k_alpha, k_w1, k_w2, k_b1, k_b2 = jax.random.split(key, 7)

    pred_nchw = jax.random.normal(k_pred, (B, C, H, W), jnp.float32)
    target_nchw = jax.random.normal(k_tgt, (B, C, H, W), jnp.float32)
    alpha = jax.random.uniform(k_alpha, (B, 1, 1, 1), jnp.float32)

    # Deterministic synthetic Discriminator (2-layer leaky-ReLU MLP).  w1 is
    # pre-rounded to bf16 values so the kernel's bf16 weight stream represents
    # the reference's f32 weights exactly.
    w1 = (jax.random.normal(k_w1, (F, HID), jnp.float32) * 0.02
          ).astype(jnp.bfloat16).astype(jnp.float32)
    b1 = jax.random.normal(k_b1, (1, HID), jnp.float32) * 0.02
    w2 = jax.random.normal(k_w2, (1, HID), jnp.float32) * 0.02    # row vector
    b2 = jax.random.normal(k_b2, (1, 1), jnp.float32) * 0.02
    disc_params = (w1, b1, w2, b2)

    # ---- Phase 'D' ----
    adv_d, gp, third = gan_loss_forward('D', disc_params, pred_nchw,
                                        target_nchw, epoch_id=1,
                                        epochs=EPOCHS, alpha=alpha)
    jax.block_until_ready((adv_d, gp))
    assert third is None

    # ---- Phase 'G' (epoch 1 < 40//4 -> L1; epoch 20 -> MSE) ----
    adv_g1, pix_l1, _ = gan_loss_forward('G', disc_params, pred_nchw,
                                         target_nchw, epoch_id=1, epochs=EPOCHS)
    adv_g2, pix_mse, _ = gan_loss_forward('G', disc_params, pred_nchw,
                                          target_nchw, epoch_id=20, epochs=EPOCHS)
    jax.block_until_ready((adv_g1, pix_l1, adv_g2, pix_mse))

    # ---- reference check ----
    pf = pred_nchw.reshape(B, F)
    tf = target_nchw.reshape(B, F)
    a2 = alpha.reshape(B, 1)

    adv_d_ref = (-jnp.mean(_disc_ref(tf, disc_params))
                 + jnp.mean(_disc_ref(pf, disc_params)))
    interp = a2 * pf + (1.0 - a2) * tf
    grad_ref = jax.grad(lambda x: jnp.sum(_disc_ref(x, disc_params)))(interp)
    gp_ref = (jnp.linalg.norm(grad_ref.reshape(B, -1)) - 1.0) ** 2

    adv_g_ref = -jnp.mean(_disc_ref(pf, disc_params))
    l1_ref = jnp.mean(jnp.abs(pf - tf))
    mse_ref = jnp.mean((pf - tf) ** 2)

    np.testing.assert_allclose(np.asarray(adv_d), np.asarray(adv_d_ref), rtol=1e-4, atol=1e-4)
    np.testing.assert_allclose(np.asarray(gp), np.asarray(gp_ref), rtol=1e-4, atol=1e-4)
    np.testing.assert_allclose(np.asarray(adv_g1), np.asarray(adv_g_ref), rtol=1e-4, atol=1e-4)
    np.testing.assert_allclose(np.asarray(pix_l1), np.asarray(l1_ref), rtol=1e-4, atol=1e-4)
    np.testing.assert_allclose(np.asarray(pix_mse), np.asarray(mse_ref), rtol=1e-4, atol=1e-4)

    print("KERNEL_OK")
</pallas_src>

<mosaic_0001>
module attributes {stable_mosaic.version = 11 : i64} {
  func.func @gan_loss_d_kernel(%arg0: i32, %arg1: i32, %arg2: memref<2x1xf32, #tpu.memory_space<vmem>>, %arg3: memref<2x512xf32, #tpu.memory_space<vmem>>, %arg4: memref<2x512xf32, #tpu.memory_space<vmem>>, %arg5: memref<512x128xbf16, #tpu.memory_space<vmem>>, %arg6: memref<128x512xbf16, #tpu.memory_space<vmem>>, %arg7: memref<1x128xf32, #tpu.memory_space<vmem>>, %arg8: memref<1x128xf32, #tpu.memory_space<vmem>>, %arg9: memref<1x1xf32, #tpu.memory_space<vmem>>, %arg10: memref<1x1xf32, #tpu.memory_space<vmem>>, %arg11: memref<1x1xf32, #tpu.memory_space<vmem>>, %arg12: memref<2x128xf32, #tpu.memory_space<vmem>>, %arg13: memref<2x128xf32, #tpu.memory_space<vmem>>, %arg14: memref<2x128xf32, #tpu.memory_space<vmem>>, %arg15: memref<1x1xf32, #tpu.memory_space<vmem>>) attributes {dimension_semantics = [#tpu.dimension_semantics<arbitrary>, #tpu.dimension_semantics<arbitrary>], iteration_bounds = array<i64: 2, 2>, scalar_prefetch = 0 : i64, scratch_operands = 4 : i64, tpu.core_type = #tpu.core_type<tc>, window_params = [{pipeline_mode = #tpu.pipeline_mode<synchronous>, transform_indices = @transform_0, window_bounds = array<i64: 2, 1>}, {transform_indices = @transform_1, window_bounds = array<i64: 2, 512>}, {transform_indices = @transform_2, window_bounds = array<i64: 2, 512>}, {transform_indices = @transform_3, window_bounds = array<i64: 512, 128>}, {transform_indices = @transform_4, window_bounds = array<i64: 128, 512>}, {pipeline_mode = #tpu.pipeline_mode<synchronous>, transform_indices = @transform_5, window_bounds = array<i64: 1, 128>}, {pipeline_mode = #tpu.pipeline_mode<synchronous>, transform_indices = @transform_6, window_bounds = array<i64: 1, 128>}, {pipeline_mode = #tpu.pipeline_mode<synchronous>, transform_indices = @transform_7, window_bounds = array<i64: 1, 1>}, {pipeline_mode = #tpu.pipeline_mode<synchronous>, transform_indices = @transform_8, window_bounds = array<i64: 1, 1>}, {pipeline_mode = #tpu.pipeline_mode<synchronous>, transform_indices = @transform_9, window_bounds = array<i64: 1, 1>}]} {
    %c0_i32 = arith.constant 0 : i32
    %0 = arith.cmpi eq, %arg0, %c0_i32 : i32
    %c0_i32_0 = arith.constant 0 : i32
    %1 = arith.cmpi eq, %arg1, %c0_i32_0 : i32
    %2 = arith.andi %0, %1 : i1
    %3 = arith.extui %2 : i1 to i32
    %c0_i32_1 = arith.constant 0 : i32
    %4 = arith.cmpi ne, %3, %c0_i32_1 : i32
    scf.if %4 {
      %cst = arith.constant 0.000000e+00 : f32
      %21 = vector.broadcast %cst : f32 to vector<2x128xf32>
      %c0 = arith.constant 0 : index
      %c0_11 = arith.constant 0 : index
      %22 = vector.load %arg12[%c0, %c0_11] : memref<2x128xf32, #tpu.memory_space<vmem>>, vector<2x128xf32>
      tpu.vector_store %arg12[%c0, %c0_11], %21 {strides = array<i32>} : memref<2x128xf32, #tpu.memory_space<vmem>>, vector<2x128xf32>,
      %cst_12 = arith.constant 0.000000e+00 : f32
      %23 = vector.broadcast %cst_12 : f32 to vector<2x128xf32>
      %c0_13 = arith.constant 0 : index
      %c0_14 = arith.constant 0 : index
      %24 = vector.load %arg13[%c0_13, %c0_14] : memref<2x128xf32, #tpu.memory_space<vmem>>, vector<2x128xf32>
      tpu.vector_store %arg13[%c0_13, %c0_14], %23 {strides = array<i32>} : memref<2x128xf32, #tpu.memory_space<vmem>>, vector<2x128xf32>,
      %cst_15 = arith.constant 0.000000e+00 : f32
      %25 = vector.broadcast %cst_15 : f32 to vector<1x1xf32>
      %c0_16 = arith.constant 0 : index
      %c0_17 = arith.constant 0 : index
      %26 = vector.load %arg15[%c0_16, %c0_17] : memref<1x1xf32, #tpu.memory_space<vmem>>, vector<1x1xf32>
      tpu.vector_store %arg15[%c0_16, %c0_17], %25 {strides = array<i32>} : memref<1x1xf32, #tpu.memory_space<vmem>>, vector<1x1xf32>,
    } else {
    }
    %c0_i32_2 = arith.constant 0 : i32
    %5 = arith.cmpi eq, %arg0, %c0_i32_2 : i32
    %6 = arith.extui %5 : i1 to i32
    %c0_i32_3 = arith.constant 0 : i32
    %7 = arith.cmpi ne, %6, %c0_i32_3 : i32
    scf.if %7 {
      %c0 = arith.constant 0 : index
      %c0_11 = arith.constant 0 : index
      %21 = vector.load %arg5[%c0, %c0_11] : memref<512x128xbf16, #tpu.memory_space<vmem>>, vector<512x128xbf16>
      %22 = arith.extf %21 : vector<512x128xbf16> to vector<512x128xf32>
      %c0_12 = arith.constant 0 : index
      %c0_13 = arith.constant 0 : index
      %23 = vector.load %arg12[%c0_12, %c0_13] : memref<2x128xf32, #tpu.memory_space<vmem>>, vector<2x128xf32>
      %c0_14 = arith.constant 0 : index
      %c0_15 = arith.constant 0 : index
      %24 = vector.load %arg3[%c0_14, %c0_15] : memref<2x512xf32, #tpu.memory_space<vmem>>, vector<2x512xf32>
      %cst = arith.constant dense<0.000000e+00> : vector<2x128xf32>
      %25 = tpu.matmul %24, %22, %cst {dimension_numbers = #tpu.dot_dimension_numbers<[1], [0], [0], [1], [0, 0, 1, 1], [], []>} : vector<2x512xf32>, vector<512x128xf32>, vector<2x128xf32> -> vector<2x128xf32>
      %26 = arith.addf %23, %25 : vector<2x128xf32>
      %c0_16 = arith.constant 0 : index
      %c0_17 = arith.constant 0 : index
      %27 = vector.load %arg12[%c0_16, %c0_17] : memref<2x128xf32, #tpu.memory_space<vmem>>, vector<2x128xf32>
      tpu.vector_store %arg12[%c0_16, %c0_17], %26 {strides = array<i32>} : memref<2x128xf32, #tpu.memory_space<vmem>>, vector<2x128xf32>,
      %c0_18 = arith.constant 0 : index
      %c0_19 = arith.constant 0 : index
      %28 = vector.load %arg13[%c0_18, %c0_19] : memref<2x128xf32, #tpu.memory_space<vmem>>, vector<2x128xf32>
      %c0_20 = arith.constant 0 : index
      %c0_21 = arith.constant 0 : index
      %29 = vector.load %arg4[%c0_20, %c0_21] : memref<2x512xf32, #tpu.memory_space<vmem>>, vector<2x512xf32>
      %cst_22 = arith.constant dense<0.000000e+00> : vector<2x128xf32>
      %30 = tpu.matmul %29, %22, %cst_22 {dimension_numbers = #tpu.dot_dimension_numbers<[1], [0], [0], [1], [0, 0, 1, 1], [], []>} : vector<2x512xf32>, vector<512x128xf32>, vector<2x128xf32> -> vector<2x128xf32>
      %31 = arith.addf %28, %30 : vector<2x128xf32>
      %c0_23 = arith.constant 0 : index
      %c0_24 = arith.constant 0 : index
      %32 = vector.load %arg13[%c0_23, %c0_24] : memref<2x128xf32, #tpu.memory_space<vmem>>, vector<2x128xf32>
      tpu.vector_store %arg13[%c0_23, %c0_24], %31 {strides = array<i32>} : memref<2x128xf32, #tpu.memory_space<vmem>>, vector<2x128xf32>,
    } else {
    }
    %c0_i32_4 = arith.constant 0 : i32
    %8 = arith.cmpi eq, %arg0, %c0_i32_4 : i32
    %c1_i32 = arith.constant 1 : i32
    %9 = arith.cmpi eq, %arg1, %c1_i32 : i32
    %10 = arith.andi %8, %9 : i1
    %11 = arith.extui %10 : i1 to i32
    %c0_i32_5 = arith.constant 0 : i32
    %12 = arith.cmpi ne, %11, %c0_i32_5 : i32
    scf.if %12 {
      %c0 = arith.constant 0 : index
      %c0_11 = arith.constant 0 : index
      %21 = vector.load %arg7[%c0, %c0_11] : memref<1x128xf32, #tpu.memory_space<vmem>>, vector<1x128xf32>
      %c0_12 = arith.constant 0 : index
      %c0_13 = arith.constant 0 : index
      %22 = vector.load %arg8[%c0_12, %c0_13] : memref<1x128xf32, #tpu.memory_space<vmem>>, vector<1x128xf32>
      %c0_14 = arith.constant 0 : index
      %c0_15 = arith.constant 0 : index
      %23 = vector.load %arg9[%c0_14, %c0_15] : memref<1x1xf32, #tpu.memory_space<vmem>>, vector<1x1xf32>
      %c0_16 = arith.constant 0 : index
      %c0_17 = arith.constant 0 : index
      %24 = vector.load %arg12[%c0_16, %c0_17] : memref<2x128xf32, #tpu.memory_space<vmem>>, vector<2x128xf32>
      %25 = vector.broadcast %21 : vector<1x128xf32> to vector<2x128xf32>
      %26 = arith.addf %24, %25 : vector<2x128xf32>
      %c0_18 = arith.constant 0 : index
      %c0_19 = arith.constant 0 : index
      %27 = vector.load %arg13[%c0_18, %c0_19] : memref<2x128xf32, #tpu.memory_space<vmem>>, vector<2x128xf32>
      %28 = vector.broadcast %21 : vector<1x128xf32> to vector<2x128xf32>
      %29 = arith.addf %27, %28 : vector<2x128xf32>
      %cst = arith.constant 0.000000e+00 : f32
      %30 = vector.broadcast %cst : f32 to vector<2x128xf32>
      %31 = arith.cmpf ogt, %26, %30 : vector<2x128xf32>
      %cst_20 = arith.constant 2.000000e-01 : f32
      %32 = vector.broadcast %cst_20 : f32 to vector<2x128xf32>
      %33 = arith.mulf %32, %26 : vector<2x128xf32>
      %34 = arith.select %31, %26, %33 : vector<2x128xi1>, vector<2x128xf32>
      %cst_21 = arith.constant 0.000000e+00 : f32
      %35 = vector.broadcast %cst_21 : f32 to vector<2x128xf32>
      %36 = arith.cmpf ogt, %29, %35 : vector<2x128xf32>
      %cst_22 = arith.constant 2.000000e-01 : f32
      %37 = vector.broadcast %cst_22 : f32 to vector<2x128xf32>
      %38 = arith.mulf %37, %29 : vector<2x128xf32>
      %39 = arith.select %36, %29, %38 : vector<2x128xi1>, vector<2x128xf32>
      %40 = vector.broadcast %22 : vector<1x128xf32> to vector<2x128xf32>
      %41 = arith.mulf %34, %40 : vector<2x128xf32>
      %cst_23 = arith.constant dense<0.000000e+00> : vector<2xf32>
      %42 = vector.multi_reduction <add>, %41, %cst_23 [1] : vector<2x128xf32> to vector<2xf32>
      %43 = vector.shape_cast %42 : vector<2xf32> to vector<2x1xf32>
      %44 = vector.broadcast %23 : vector<1x1xf32> to vector<2x1xf32>
      %45 = arith.addf %43, %44 : vector<2x1xf32>
      %46 = vector.broadcast %22 : vector<1x128xf32> to vector<2x128xf32>
      %47 = arith.mulf %39, %46 : vector<2x128xf32>
      %cst_24 = arith.constant dense<0.000000e+00> : vector<2xf32>
      %48 = vector.multi_reduction <add>, %47, %cst_24 [1] : vector<2x128xf32> to vector<2xf32>
      %49 = vector.shape_cast %48 : vector<2xf32> to vector<2x1xf32>
      %50 = vector.broadcast %23 : vector<1x1xf32> to vector<2x1xf32>
      %51 = arith.addf %49, %50 : vector<2x1xf32>
      %cst_25 = arith.constant dense<0.000000e+00> : vector<1xf32>
      %52 = vector.multi_reduction <add>, %45, %cst_25 [0] : vector<2x1xf32> to vector<1xf32>
      %53 = vector.shape_cast %52 : vector<1xf32> to vector<1x1xf32>
      %cst_26 = arith.constant dense<0.000000e+00> : vector<1xf32>
      %54 = vector.multi_reduction <add>, %51, %cst_26 [0] : vector<2x1xf32> to vector<1xf32>
      %55 = vector.shape_cast %54 : vector<1xf32> to vector<1x1xf32>
      %56 = arith.subf %53, %55 : vector<1x1xf32>
      %cst_27 = arith.constant 5.000000e-01 : f32
      %57 = vector.broadcast %cst_27 : f32 to vector<1x1xf32>
      %58 = arith.mulf %56, %57 : vector<1x1xf32>
      %c0_28 = arith.constant 0 : index
      %c0_29 = arith.constant 0 : index
      %59 = vector.load %arg10[%c0_28, %c0_29] : memref<1x1xf32, #tpu.memory_space<vmem>>, vector<1x1xf32>
      tpu.vector_store %arg10[%c0_28, %c0_29], %58 {strides = array<i32>} : memref<1x1xf32, #tpu.memory_space<vmem>>, vector<1x1xf32>,
      %c0_30 = arith.constant 0 : index
      %c0_31 = arith.constant 0 : index
      %60 = vector.load %arg2[%c0_30, %c0_31] : memref<2x1xf32, #tpu.memory_space<vmem>>, vector<2x1xf32>
      %61 = vector.broadcast %60 : vector<2x1xf32> to vector<2x128xf32>
      %62 = arith.mulf %61, %26 : vector<2x128xf32>
      %cst_32 = arith.constant 1.000000e+00 : f32
      %63 = vector.broadcast %cst_32 : f32 to vector<2x1xf32>
      %64 = arith.subf %63, %60 : vector<2x1xf32>
      %65 = vector.broadcast %64 : vector<2x1xf32> to vector<2x128xf32>
      %66 = arith.mulf %65, %29 : vector<2x128xf32>
      %67 = arith.addf %62, %66 : vector<2x128xf32>
      %cst_33 = arith.constant 0.000000e+00 : f32
      %68 = vector.broadcast %cst_33 : f32 to vector<2x128xf32>
      %69 = arith.cmpf ogt, %67, %68 : vector<2x128xf32>
      %cst_34 = arith.constant 1.000000e+00 : f32
      %cst_35 = arith.constant 2.000000e-01 : f32
      %70 = vector.broadcast %cst_34 : f32 to vector<2x128xf32>
      %71 = vector.broadcast %cst_35 : f32 to vector<2x128xf32>
      %72 = arith.select %69, %70, %71 : vector<2x128xi1>, vector<2x128xf32>
      %73 = vector.broadcast %22 : vector<1x128xf32> to vector<2x128xf32>
      %74 = arith.mulf %72, %73 : vector<2x128xf32>
      %c0_36 = arith.constant 0 : index
      %c0_37 = arith.constant 0 : index
      %75 = vector.load %arg14[%c0_36, %c0_37] : memref<2x128xf32, #tpu.memory_space<vmem>>, vector<2x128xf32>
      tpu.vector_store %arg14[%c0_36, %c0_37], %74 {strides = array<i32>} : memref<2x128xf32, #tpu.memory_space<vmem>>, vector<2x128xf32>,
    } else {
    }
    %c1_i32_6 = arith.constant 1 : i32
    %13 = arith.cmpi eq, %arg0, %c1_i32_6 : i32
    %14 = arith.extui %13 : i1 to i32
    %c0_i32_7 = arith.constant 0 : i32
    %15 = arith.cmpi ne, %14, %c0_i32_7 : i32
    scf.if %15 {
      %c0 = arith.constant 0 : index
      %c0_11 = arith.constant 0 : index
      %21 = vector.load %arg14[%c0, %c0_11] : memref<2x128xf32, #tpu.memory_space<vmem>>, vector<2x128xf32>
      %c0_12 = arith.constant 0 : index
      %c0_13 = arith.constant 0 : index
      %22 = vector.load %arg6[%c0_12, %c0_13] : memref<128x512xbf16, #tpu.memory_space<vmem>>, vector<128x512xbf16>
      %23 = arith.extf %22 : vector<128x512xbf16> to vector<128x512xf32>
      %cst = arith.constant dense<0.000000e+00> : vector<2x512xf32>
      %24 = tpu.matmul %21, %23, %cst {dimension_numbers = #tpu.dot_dimension_numbers<[1], [0], [0], [1], [0, 0, 1, 1], [], []>} : vector<2x128xf32>, vector<128x512xf32>, vector<2x512xf32> -> vector<2x512xf32>
      %c0_14 = arith.constant 0 : index
      %c0_15 = arith.constant 0 : index
      %25 = vector.load %arg15[%c0_14, %c0_15] : memref<1x1xf32, #tpu.memory_space<vmem>>, vector<1x1xf32>
      %26 = arith.mulf %24, %24 : vector<2x512xf32>
      %cst_16 = arith.constant dense<0.000000e+00> : vector<2xf32>
      %27 = vector.multi_reduction <add>, %26, %cst_16 [1] : vector<2x512xf32> to vector<2xf32>
      %28 = vector.shape_cast %27 : vector<2xf32> to vector<2x1xf32>
      %cst_17 = arith.constant dense<0.000000e+00> : vector<1xf32>
      %29 = vector.multi_reduction <add>, %28, %cst_17 [0] : vector<2x1xf32> to vector<1xf32>
      %30 = vector.shape_cast %29 : vector<1xf32> to vector<1x1xf32>
      %31 = arith.addf %25, %30 : vector<1x1xf32>
      %c0_18 = arith.constant 0 : index
      %c0_19 = arith.constant 0 : index
      %32 = vector.load %arg15[%c0_18, %c0_19] : memref<1x1xf32, #tpu.memory_space<vmem>>, vector<1x1xf32>
      tpu.vector_store %arg15[%c0_18, %c0_19], %31 {strides = array<i32>} : memref<1x1xf32, #tpu.memory_space<vmem>>, vector<1x1xf32>,
    } else {
    }
    %c1_i32_8 = arith.constant 1 : i32
    %16 = arith.cmpi eq, %arg0, %c1_i32_8 : i32
    %c1_i32_9 = arith.constant 1 : i32
    %17 = arith.cmpi eq, %arg1, %c1_i32_9 : i32
    %18 = arith.andi %16, %17 : i1
    %19 = arith.extui %18 : i1 to i32
    %c0_i32_10 = arith.constant 0 : i32
    %20 = arith.cmpi ne, %19, %c0_i32_10 : i32
    scf.if %20 {
      %c0 = arith.constant 0 : index
      %c0_11 = arith.constant 0 : index
      %21 = vector.load %arg15[%c0, %c0_11] : memref<1x1xf32, #tpu.memory_space<vmem>>, vector<1x1xf32>
      %22 = math.sqrt %21 : vector<1x1xf32>
      %cst = arith.constant 1.000000e+00 : f32
      %23 = vector.broadcast %cst : f32 to vector<1x1xf32>
      %24 = arith.subf %22, %23 : vector<1x1xf32>
      %25 = arith.mulf %24, %24 : vector<1x1xf32>
      %c0_12 = arith.constant 0 : index
      %c0_13 = arith.constant 0 : index
      %26 = vector.load %arg11[%c0_12, %c0_13] : memref<1x1xf32, #tpu.memory_space<vmem>>, vector<1x1xf32>
      tpu.vector_store %arg11[%c0_12, %c0_13], %25 {strides = array<i32>} : memref<1x1xf32, #tpu.memory_space<vmem>>, vector<1x1xf32>,
    } else {
    }
    return
  }
  func.func @transform_0(%arg0: i32, %arg1: i32) -> (i32, i32) {
    %c0_i32 = arith.constant 0 : i32
    %c0_i32_0 = arith.constant 0 : i32
    %c0_i32_1 = arith.constant 0 : i32
    return %c0_i32, %c0_i32_0 : i32, i32
  }
  func.func @transform_1(%arg0: i32, %arg1: i32) -> (i32, i32) {
    %c1_i32 = arith.constant 1 : i32
    %0 = arith.subi %c1_i32, %arg1 : i32
    %c1_i32_0 = arith.constant 1 : i32
    %1 = arith.subi %c1_i32_0, %arg0 : i32
    %2 = arith.muli %0, %1 : i32
    %c0_i32 = arith.constant 0 : i32
    %c0_i32_1 = arith.constant 0 : i32
    return %c0_i32, %2 : i32, i32
  }
  func.func @transform_2(%arg0: i32, %arg1: i32) -> (i32, i32) {
    %c1_i32 = arith.constant 1 : i32
    %0 = arith.subi %c1_i32, %arg1 : i32
    %c1_i32_0 = arith.constant 1 : i32
    %1 = arith.subi %c1_i32_0, %arg0 : i32
    %2 = arith.muli %0, %1 : i32
    %c0_i32 = arith.constant 0 : i32
    %c0_i32_1 = arith.constant 0 : i32
    return %c0_i32, %2 : i32, i32
  }
  func.func @transform_3(%arg0: i32, %arg1: i32) -> (i32, i32) {
    %c1_i32 = arith.constant 1 : i32
    %0 = arith.subi %c1_i32, %arg1 : i32
    %c1_i32_0 = arith.constant 1 : i32
    %1 = arith.subi %c1_i32_0, %arg0 : i32
    %2 = arith.muli %0, %1 : i32
    %c0_i32 = arith.constant 0 : i32
    %c0_i32_1 = arith.constant 0 : i32
    return %2, %c0_i32 : i32, i32
  }
  func.func @transform_4(%arg0: i32, %arg1: i32) -> (i32, i32) {
    %0 = arith.muli %arg1, %arg0 : i32
    %c0_i32 = arith.constant 0 : i32
    %c0_i32_0 = arith.constant 0 : i32
    return %c0_i32, %0 : i32, i32
  }
  func.func @transform_5(%arg0: i32, %arg1: i32) -> (i32, i32) {
    %c0_i32 = arith.constant 0 : i32
    %c0_i32_0 = arith.constant 0 : i32
    %c0_i32_1 = arith.constant 0 : i32
    return %c0_i32, %c0_i32_0 : i32, i32
  }
  func.func @transform_6(%arg0: i32, %arg1: i32) -> (i32, i32) {
    %c0_i32 = arith.constant 0 : i32
    %c0_i32_0 = arith.constant 0 : i32
    %c0_i32_1 = arith.constant 0 : i32
    return %c0_i32, %c0_i32_0 : i32, i32
  }
  func.func @transform_7(%arg0: i32, %arg1: i32) -> (i32, i32) {
    %c0_i32 = arith.constant 0 : i32
    %c0_i32_0 = arith.constant 0 : i32
    %c0_i32_1 = arith.constant 0 : i32
    return %c0_i32, %c0_i32_0 : i32, i32
  }
  func.func @transform_8(%arg0: i32, %arg1: i32) -> (i32, i32) {
    %c0_i32 = arith.constant 0 : i32
    %c0_i32_0 = arith.constant 0 : i32
    %c0_i32_1 = arith.constant 0 : i32
    return %c0_i32, %c0_i32_0 : i32, i32
  }
  func.func @transform_9(%arg0: i32, %arg1: i32) -> (i32, i32) {
    %c0_i32 = arith.constant 0 : i32
    %c0_i32_0 = arith.constant 0 : i32
    %c0_i32_1 = arith.constant 0 : i32
    return %c0_i32, %c0_i32_0 : i32, i32
  }
}

</mosaic_0001>

<bundles_post_ra>
// kernel: tpu_custom_call.1
= control target key start
LH: loop header
LB: loop body
LE: loop exit
PB: predicated region body
PF: predicated region fallthrough
CT: control target
= control target key end

     0   :  { %s3168_s0 = inlined_call_operand.vmem [shape: f32[2,1], index: 0, kind: input, shape index: {}]   ;;  %s3169_s1 = inlined_call_operand.hbm [shape: f32[2,1024], index: 1, kind: input, shape index: {}]   ;;  %s3170_s2 = inlined_call_operand.hbm [shape: f32[2,1024], index: 2, kind: input, shape index: {}]   ;;  %s3171_s3 = inlined_call_operand.hbm [shape: bf16[1024,128], index: 3, kind: input, shape index: {}]   ;;  %s3172_s4 = inlined_call_operand.hbm [shape: bf16[128,1024], index: 4, kind: input, shape index: {}]   ;;  %s3173_s5 = inlined_call_operand.vmem [shape: f32[1,128], index: 5, kind: input, shape index: {}]   ;;  %s3174_s6 = inlined_call_operand.vmem [shape: f32[1,128], index: 6, kind: input, shape index: {}]   ;;  %s3175_s7 = inlined_call_operand.<no memory space> [shape: f32[1,1], index: 7, kind: input, shape index: {}]   ;;  %s3176_s8 = inlined_call_operand.hbm [shape: f32[1,1], index: 8, kind: output, shape index: {0}]   ;;  %s3177_s9 = inlined_call_operand.hbm [shape: f32[1,1], index: 9, kind: output, shape index: {1}]  }
   0x1   :  { %3196 = sst [smem:[#allocation31_spill]] %s3168_s0  ;;  %v15_v0 = vstv %s3175_s7 }
   0x2   :  { %3197 = sst [smem:[#allocation32_spill]] %s3170_s2  ;;  %16 = vst [vmem:[#allocation6] sm:$0x1] %v15_v0 }
   0x3   :  { %3198 = sst [smem:[#allocation33_spill]] %s3173_s5 }
   0x4   :  { %3199 = sst [smem:[#allocation34_spill]] %s3174_s6 }
   0x5   :  { %3200 = sst [smem:[#allocation35_spill]] %s3176_s8 }
   0x6   :  { %3201 = sst [smem:[#allocation36_spill]] %s3177_s9 }
   0x7   :  { %17 = vsyncpa [#allocation8], 0 }
   0x8   :  { %19 = vsyncpa [#allocation8 + $0x1], 0 }
   0x9   :  { %20 = vsyncpa [#allocation11], 0 }
   0xa   :  { %22 = vsyncpa [#allocation11 + $0x1], 0 }
   0xb   :  { %23 = vsyncpa [#allocation14], 0 }
   0xc   :  { %25 = vsyncpa [#allocation14 + $0x1], 0 }
   0xd   :  { %26 = vsyncpa [#allocation9], 0 }
   0xe   :  { %27 = vsyncpa [#allocation17], 0  ;;  %s2604_s11 = smov 0   ;;  %s2606_s12 = smov 0  }
   0xf   :  { %s2608_s13 = smov 0   ;;  %s2610_s14 = smov 0  }
  0x10   :  { %s2612_s15 = smov 0   ;;  %s2614_s7 = smov 0  }
  0x11   :  { %s2616_s16 = smov 0   ;;  %s2618_s17 = smov 0  }
  0x12   :  { %s2620_s18 = smov 0   ;;  %s2622_s19 = smov 0  }
  0x13   :  { %s2624_s20 = smov 0  }
  0x14 LB: > { %3202 = sst [smem:[#allocation23_spill]] %s2497_s12  ;;  %s2660_s21 = sadd.s32 4294967295, %s2533_s20   ;;  %s2533_s20 = sphi %s2624_s20, %s33_s20   ;;  %s2529_s19 = sphi %s2622_s19, %s3257_s19   ;;  %s2525_s18 = sphi %s2620_s18, %s3256_s18   ;;  %s2521_s17 = sphi %s2618_s17, %s3255_s17   ;;  %s2517_s16 = sphi %s2616_s16, %s3254_s16   ;;  %s2513_s7 = sphi %s2614_s7, %s3249_s7   ;;  %s2509_s15 = sphi %s2612_s15, %s3253_s15   ;;  %s2505_s14 = sphi %s2610_s14, %s3252_s14   ;;  %s2501_s13 = sphi %s2608_s13, %s3251_s13   ;;  %s2497_s12 = sphi %s2606_s12, %s3250_s12   ;;  %s2493_s11 = sphi %s2604_s11, %s3247_s11  }
  0x15   : > { %3203 = sst [smem:[#allocation24_spill]] %s2513_s7  ;;  %s42_s22 = sadd.s32 1, %s2525_s18 }
  0x16   : > { %3204 = sst [smem:[#allocation25_spill]] %s2517_s16  ;;  %p43_p0 = scmp.ge.s32.totalorder %s42_s22, 2 }
  0x17   : > { %3205 = sst [smem:[#allocation26_spill]] %s2521_s17  ;;  %s45_s23 = sadd.s32 1, %s2529_s19 }
  0x18   : > { %3206 = sst [smem:[#allocation27_spill]] %s2533_s20  ;;  %s70_s24 = ssub.s32 1, %s2525_s18 }
  0x19   : > { %3207 = sst [smem:[#allocation28_spill]] %s2660_s21  ;;  %s71_s25 = ssub.s32 1, %s2529_s19 }
  0x1a   : > { %s3259_s22 = smov (%p43_p0, %s42_s22), 0  ;;  %s3261_s23 = smov (!%p43_p0, %s45_s23), %s2529_s19 }
  0x1b   : > { %s2669_s26 = smul.u32 %s71_s25, %s70_s24  ;;  %s73_s27 = ssub.s32 1, %s3259_s22 }
  0x1c   : > { %p47_p1 = scmp.ge.s32.totalorder %s3261_s23, 2  ;;  %s79_s28 = sadd.s32 1, %s2513_s7 }
  0x1d   : > { %p86_p2 = scmp.ne.s32.totalorder %s2513_s7, %s2509_s15  ;;  %p87_p3 = scmp.eq.s32.totalorder %s2533_s20, 0 }
  0x1e   : > { %s3263_s23 = smov (%p47_p1, %s3261_s23), 0  ;;  %p92_p5 = scmp.ne.s32.totalorder %s2509_s15, %s2505_s14 }
  0x1f   : > { %p2678_p4 = por %p87_p3, %p86_p2  ;;  %s74_s30 = ssub.s32 1, %s3263_s23 }
  0x20   : > { %p93_p6 = scmp.eq.s32.totalorder %s2660_s21, 0  ;;  %s75_s10 = smul.u32 %s74_s30, %s73_s27 }
  0x21   : > { %p178_p7 = scmp.ne.s32.totalorder %s2501_s13, %s2497_s12  ;;  %p184_p11 = scmp.ne.s32.totalorder %s2497_s12, %s2493_s11 }
  0x22   : > { %p2688_p8 = por %p93_p6, %p92_p5  ;;  %s76_s9 = ssub.s32 %s2669_s26, %s75_s10 }
  0x23   : > { %p2695_p9 = por %p178_p7, %p87_p3  ;;  %p77_p10 = scmp.eq.s32.totalorder %s76_s9, 0 }
  0x24   : > { %s3209_s24 = scalar_select %p2688_p8, 1, 0 }
  0x25   : > { %s3210_s8 = scalar_select %p2695_p9, 1, 0 }
  0x26   : > { %p3186_p12 = scmp.lt.s32.totalorder %s2533_s20, 4  ;;  %p2705_p13 = por %p184_p11, %p93_p6 }
  0x27   : > { %s2703_s14 = scalar_select %p77_p10, %s2513_s7, %s79_s28  }
  0x28   : > { %s3212_s6 = scalar_select %p2705_p13, 1, 0 }
  0x29   : > { %3211 = sst [smem:[#allocation29_spill]] %s2703_s14  ;;  %s2710_s27 = sand.u32 1, %s2513_s7  }
  0x2a   : > { %3213 = sst [smem:[#allocation30_spill]] %s3212_s6  ;;  %s3184_s30 = sshll.u32 %s2710_s27, 3 }
  0x2b   : > { %s3185_s10 = sshll.u32 %s2669_s26, 7  ;;  %p2718_p0 = pnand %p3186_p12, %p2678_p4 }
  0x2c   : > { %s347_s9 = sand.u32 1, %s2533_s20   ;;  %s3215_s2 = sld [smem:[#allocation32_spill]] }
  0x2d   : > { %s351_s7 = scalar_lea.vmem [#allocation10], %s3184_s30  ;;  %s1517_s0 = sshll.u32 %s2710_s27, 8 }
  0x2e   : > { %s362_s29 = sshll.u32 %s351_s7, 4  ;;  %s2735_s5 = scalar_lea.sflag [#allocation11], %s347_s9  ;;  %s2733_s29 = int_to_ptr.vmem [resolvable:$true] %s362_s29 }
  0x2f   : > { %p2741_p2 = pneg %p2718_p0 }
  0x32   : > { %s2728_s14 = scalar_lea.hbm %s3215_s2, %s3185_s10  ;;  %s2260_s7 = scalar_lea.hbm %s3215_s2, 256 }
  0x33   : > { %s2255_s16 = scalar_lea.hbm %s2728_s14, 128  ;;  %p2261_p5 = scmp.lt.u32.totalorder %s2728_s14, %s3215_s2 }
  0x34   : > { %p2256_p1 = scmp.ne.s32.totalorder %s2728_s14, %s2255_s16  ;;  %p2262_p6 = scmp.lt.u32.totalorder %s2260_s7, %s2255_s16 }
  0x35   : > { %p2264_p10 = scmp.lt.u32.totalorder %s2255_s16, %s2728_s14 }
  0x36   : > { %p2258_p3 = pnand %p2741_p2, %p2256_p1  ;;  %p2263_p7 = por %p2262_p6, %p2261_p5 }
  0x38   : > { %p2259_p4 = pneg %p2258_p3  ;;  %p2265_p11 = por %p2264_p10, %p2263_p7 }
  0x3a   : > { %p2266_p12 = pnand %p2265_p11, %p2259_p4 }
  0x3c   : > { %2269 = shalt.err (!%p2266_p12)
}
  0x3d   : > { %s2270_s9 = scalar_lea.vmem %s2733_s29, 128  ;;  %s2535_s11 = smov [#allocation10]  }
  0x3e   : > { %p2271_p1 = scmp.ne.s32.totalorder %s2733_s29, %s2270_s9  ;;  %s2275_s28 = sshll.u32 %s2535_s11, 4  ;;  %s2276_s28 = int_to_ptr.vmem [resolvable:$false] %s2275_s28 }
  0x3f   : > { %s2277_s30 = scalar_lea.vmem %s2276_s28, 256  ;;  %p2278_p8 = scmp.lt.s32.totalorder %s2733_s29, %s2276_s28 }
  0x40   : > { %p2273_p3 = pnand %p2271_p1, %p2741_p2  ;;  %p2279_p9 = scmp.lt.s32.totalorder %s2277_s30, %s2270_s9 }
  0x42   : > { %p2274_p13 = pneg %p2273_p3  ;;  %p2280_p5 = por %p2279_p9, %p2278_p8 }
  0x44   : > { %p2281_p6 = pnand %p2280_p5, %p2274_p13 }
  0x46   : > { %2284 = shalt.err (!%p2281_p6)
}
  0x47   : > { %2089 = dma.hbm_to_vmem [thread:$0]  (!%p2718_p0), %s2728_s14, 128, %s2733_s29, %s2735_s5  }
  0x48   : > { %s373_s16 = scalar_lea.vmem [#allocation12], %s1517_s0  ;;  %p3217_p8 = scmp.ne.s32.totalorder %s3210_s8, 0 }
  0x49   : > { %s383_s10 = sshll.u32 %s373_s16, 4  ;;  %p3218_p9 = scmp.lt.s32.totalorder %s2533_s20, 4  ;;  %s2775_s10 = int_to_ptr.vmem [resolvable:$true] %s383_s10 }
  0x4a   : > { %p1523_p13 = scmp.ge.s32.totalorder %s2533_s20, 1  ;;  %p413_p4 = scmp.lt.s32.totalorder %s2533_s20, 5 }
  0x4b   : > { %p2771_p12 = pnand %p3218_p9, %p3217_p8  ;;  %s3221_s11 = sshll.u32 %s2669_s26, 7 }
  0x4c   : > { %p2779_p7 = pnand %p1523_p13, %p413_p4  ;;  %s2788_s0 = scalar_lea.hbm %s3169_s1, %s3221_s11 }
  0x4d   : > { %s3219_s7 = scalar_select %p2771_p12, 1, 0 }
  0x4e   : > { %s3220_s9 = scalar_select %p2779_p7, 1, 0 }
  0x4f   : > { %s3222_s8 = sshll.u32 %s2710_s27, 3  ;;  %s1542_s16 = sshll.u32 %s2669_s26, 12 }
  0x50   : > { %s329_s28 = scalar_lea.vmem [#allocation7], %s3222_s8  ;;  %s2798_s6 = scalar_lea.hbm %s3171_s3, %s1542_s16 }
  0x51   : > { %s340_s30 = sshll.u32 %s329_s28, 4  ;;  %s326_s12 = scalar_lea.sflag [#allocation8], %s2710_s27  ;;  %s2793_s30 = int_to_ptr.vmem [resolvable:$true] %s340_s30 }
  0x52   : > { %s2285_s21 = scalar_lea.hbm %s2788_s0, 128  ;;  %s2290_s29 = scalar_lea.hbm %s3169_s1, 256 }
  0x53   : > { %p2286_p10 = scmp.ne.s32.totalorder %s2788_s0, %s2285_s21  ;;  %p2291_p3 = scmp.lt.u32.totalorder %s2788_s0, %s3169_s1 }
  0x54   : > { %p2292_p5 = scmp.lt.u32.totalorder %s2290_s29, %s2285_s21  ;;  %p2294_p8 = scmp.lt.u32.totalorder %s2285_s21, %s2788_s0 }
  0x55   : > { %p2288_p11 = pnand %p2286_p10, %p2741_p2 }
  0x56   : > { %p2293_p6 = por %p2292_p5, %p2291_p3 }
  0x57   : > { %p2289_p1 = pneg %p2288_p11 }
  0x58   : > { %p2295_p9 = por %p2294_p8, %p2293_p6 }
  0x5a   : > { %p2296_p13 = pnand %p2295_p9, %p2289_p1 }
  0x5c   : > { %2299 = shalt.err (!%p2296_p13)
}
  0x5d   : > { %s2300_s2 = scalar_lea.vmem %s2793_s30, 128  ;;  %s2536_s20 = smov [#allocation7]  }
  0x5e   : > { %p2301_p4 = scmp.ne.s32.totalorder %s2793_s30, %s2300_s2  ;;  %s2305_s26 = sshll.u32 %s2536_s20, 4  ;;  %s2306_s26 = int_to_ptr.vmem [resolvable:$false] %s2305_s26 }
  0x5f   : > { %s2307_s27 = scalar_lea.vmem %s2306_s26, 256  ;;  %p2308_p7 = scmp.lt.s32.totalorder %s2793_s30, %s2306_s26 }
  0x60   : > { %p2303_p10 = pnand %p2301_p4, %p2741_p2  ;;  %p2309_p12 = scmp.lt.s32.totalorder %s2307_s27, %s2300_s2 }
  0x62   : > { %p2304_p11 = pneg %p2303_p10  ;;  %p2310_p3 = por %p2309_p12, %p2308_p7 }
  0x64   : > { %p2311_p5 = pnand %p2310_p3, %p2304_p11 }
  0x66   : > { %2314 = shalt.err (!%p2311_p5)
}
  0x67   : > { %2086 = dma.hbm_to_vmem [thread:$0]  (!%p2718_p0), %s2788_s0, 128, %s2793_s30, %s326_s12  }
  0x68   : > { %s2315_s21 = scalar_lea.hbm %s2798_s6, 4096  ;;  %s2320_s14 = scalar_lea.hbm %s3171_s3, 8192 }
  0x69   : > { %p2316_p1 = scmp.ne.s32.totalorder %s2798_s6, %s2315_s21  ;;  %p2321_p12 = scmp.lt.u32.totalorder %s2798_s6, %s3171_s3 }
  0x6a   : > { %p2322_p7 = scmp.lt.u32.totalorder %s2320_s14, %s2315_s21  ;;  %p2324_p13 = scmp.lt.u32.totalorder %s2315_s21, %s2798_s6 }
  0x6b   : > { %p2318_p6 = pnand %p2316_p1, %p2741_p2 }
  0x6c   : > { %p2323_p9 = por %p2322_p7, %p2321_p12 }
  0x6d   : > { %p2319_p8 = pneg %p2318_p6 }
  0x6e   : > { %p2325_p4 = por %p2324_p13, %p2323_p9 }
  0x70   : > { %p2326_p10 = pnand %p2325_p4, %p2319_p8 }
  0x72   : > { %2329 = shalt.err (!%p2326_p10)
}
  0x73   : > { %s2330_s12 = scalar_lea.vmem %s2775_s10, 4096  ;;  %s2537_s0 = smov [#allocation12]  }
  0x74   : > { %p2331_p11 = scmp.ne.s32.totalorder %s2775_s10, %s2330_s12  ;;  %s2335_s30 = sshll.u32 %s2537_s0, 4  ;;  %s2336_s30 = int_to_ptr.vmem [resolvable:$false] %s2335_s30 }
  0x75   : > { %s2337_s28 = scalar_lea.vmem %s2336_s30, 8192  ;;  %p2338_p1 = scmp.lt.s32.totalorder %s2775_s10, %s2336_s30 }
  0x76   : > { %p2333_p3 = pnand %p2331_p11, %p2741_p2  ;;  %p2339_p6 = scmp.lt.s32.totalorder %s2337_s28, %s2330_s12 }
  0x78   : > { %p2334_p5 = pneg %p2333_p3  ;;  %p2340_p12 = por %p2339_p6, %p2338_p1 }
  0x7a   : > { %p2341_p7 = pnand %p2340_p12, %p2334_p5 }
  0x7c   : > { %2344 = shalt.err (!%p2341_p7)
}
  0x7d   : > { %s2538_s2 = smov 64   ;;  %s2539_s17 = smov 4  }
  0x7e   : > { %2092 = dma.hbm_to_vmem [thread:$0]  (!%p2718_p0), %s2798_s6, 4096, %s2775_s10, %s2735_s5, %s2538_s2, %s2538_s2, %s2539_s17  }
  0x7f   : > { %s166_s20 = smul.u32 %s2525_s18, %s2529_s19  ;;  %s171_s26 = sadd.s32 1, %s2501_s13 }
  0x80   : > { %s393_s27 = sand.u32 1, %s2501_s13   ;;  %s3223_s21 = smul.u32 %s3263_s23, %s3259_s22 }
  0x81   : > { %s1520_s11 = sshll.u32 %s393_s27, 8  ;;  %s1543_s14 = sshll.u32 %s166_s20, 8 }
  0x82   : > { %s168_s16 = ssub.s32 %s166_s20, %s3223_s21  ;;  %s2857_s0 = scalar_lea.hbm %s3172_s4, %s1543_s14 }
  0x83   : > { %p169_p2 = scmp.eq.s32.totalorder %s168_s16, 0  ;;  %s397_s5 = scalar_lea.vmem [#allocation13], %s1520_s11 }
  0x84   : > { %s405_s6 = sshll.u32 %s397_s5, 4  ;;  %s2861_s25 = scalar_lea.sflag [#allocation14], %s393_s27  ;;  %s2859_s6 = int_to_ptr.vmem [resolvable:$true] %s405_s6 }
  0x85   : > { %s2852_s29 = scalar_select %p169_p2, %s2501_s13, %s171_s26  }
  0x86   : > { %s2345_s10 = scalar_lea.hbm %s2857_s0, 4096  ;;  %p3224_p8 = scmp.ne.s32.totalorder %s3219_s7, 0 }
  0x87   : > { %p2346_p0 = scmp.ne.s32.totalorder %s2857_s0, %s2345_s10  ;;  %s2350_s2 = scalar_lea.hbm %s3172_s4, 8192 }
  0x88   : > { %p2347_p9 = pneg %p3224_p8  ;;  %p2351_p10 = scmp.lt.u32.totalorder %s2857_s0, %s3172_s4 }
  0x89   : > { %p2352_p11 = scmp.lt.u32.totalorder %s2350_s2, %s2345_s10  ;;  %p2354_p5 = scmp.lt.u32.totalorder %s2345_s10, %s2857_s0 }
  0x8a   : > { %p2348_p13 = pnand %p2347_p9, %p2346_p0 }
  0x8b   : > { %p2353_p3 = por %p2352_p11, %p2351_p10 }
  0x8c   : > { %p2349_p4 = pneg %p2348_p13 }
  0x8d   : > { %p2355_p1 = por %p2354_p5, %p2353_p3 }
  0x8f   : > { %p2356_p6 = pnand %p2355_p1, %p2349_p4 }
  0x91   : > { %2359 = shalt.err (!%p2356_p6)
}
  0x92   : > { %s2360_s26 = scalar_lea.vmem %s2859_s6, 4096  ;;  %s2540_s27 = smov [#allocation13]  }
  0x93   : > { %p2361_p12 = scmp.ne.s32.totalorder %s2859_s6, %s2360_s26  ;;  %s2365_s21 = sshll.u32 %s2540_s27, 4  ;;  %s2366_s21 = int_to_ptr.vmem [resolvable:$false] %s2365_s21 }
  0x94   : > { %s2367_s16 = scalar_lea.vmem %s2366_s21, 8192  ;;  %p2368_p0 = scmp.lt.s32.totalorder %s2859_s6, %s2366_s21 }
  0x95   : > { %p2363_p7 = pnand %p2361_p12, %p2347_p9  ;;  %p2369_p13 = scmp.lt.s32.totalorder %s2367_s16, %s2360_s26 }
  0x97   : > { %p2364_p2 = pneg %p2363_p7  ;;  %p2370_p10 = por %p2369_p13, %p2368_p0 }
  0x99   : > { %p2371_p11 = pnand %p2370_p10, %p2364_p2 }
  0x9b   : > { %2374 = shalt.err (!%p2371_p11)
}
  0x9c   : > { %s2541_s11 = smov 512   ;;  %s2542_s14 = smov 256  }
  0x9d   : > { %s2543_s8 = smov 16   ;;  %p3225_p9 = scmp.ne.s32.totalorder %s3220_s9, 0 }
  0x9e   : > { %2095 = dma.hbm_to_vmem [thread:$0]  (!%p3224_p8), %s2857_s0, 4096, %s2859_s6, %s2861_s25, %s2541_s11, %s2542_s14, %s2543_s8  }
  0x9f   : > { %417 = sbr.rel (%p3225_p9) target bundleno = 1198 (0x4ae), region = 52  ;;  %s419_s12 = sand.u32 (!%p3225_p9), 1, %s2509_s15  }
  0xa0   : > { %s1524_s5 = sshll.u32 (!%p3225_p9), %s419_s12, 3  ;;  %s420_s10 = scalar_lea.sflag (!%p3225_p9), [#allocation8], %s419_s12 }
  0xa1   : > { %s2892_s30 = scalar_lea.vmem (!%p3225_p9), [#allocation7], %s1524_s5  ;;  %p3226_p4 = scmp.ne.s32.totalorder (!%p3225_p9), %s3209_s24, 0 }
  0xa6   : > { %2472 = dma.done.wait (%p3226_p4), %s420_s10, 128  }
  0xa7   : > { %2474 = vsyncadd (%p3226_p4), %s420_s10, 4294967168  ;;  %s3227_s28 = sld [smem:[#allocation28_spill]]  ;;  %s2899_s0 = scalar_lea.vmem [#allocation10], %s1524_s5 }
  0xad   : > { %s428_s2 = sand.u32 1, %s3227_s28  }
  0xae   : > { %s429_s7 = scalar_lea.sflag [#allocation11], %s428_s2 }
  0xaf   : > { %2476 = dma.done.wait (%p3226_p4), %s429_s7, 4224  }
  0xb0   : > { %2478 = vsyncadd (%p3226_p4), %s429_s7, 4294963072  ;;  %s3228_s9 = sld [smem:[#allocation23_spill]]  ;;  %s3229_s6 = sld [smem:[#allocation30_spill]] }
  0xb1   : > { %s1526_s25 = sshll.u32 %s419_s12, 8 }
  0xb2   : > { %s2906_s26 = scalar_lea.vmem [#allocation12], %s1526_s25 }
  0xb6   : > { %s446_s17 = sand.u32 1, %s3228_s9   ;;  %p3230_p8 = scmp.ne.s32.totalorder %s3229_s6, 0 }
  0xb7   : > { %s1527_s20 = sshll.u32 %s446_s17, 8  ;;  %s447_s27 = scalar_lea.sflag [#allocation14], %s446_s17 }
  0xb8   : > { %s2908_s21 = scalar_lea.vmem [#allocation13], %s1527_s20 }
  0xb9   : > { %2480 = dma.done.wait (%p3230_p8), %s447_s27, 4096  }
  0xba   : > { %2482 = vsyncadd (%p3230_p8), %s447_s27, 4294963200  ;;  %s3231_s16 = sld [smem:[#allocation26_spill]]  ;;  %s3232_s11 = sld [smem:[#allocation25_spill]] }
  0xc0   : > { %p509_p3 = scmp.eq.s32.totalorder %s3231_s16, 0  ;;  %p510_p5 = scmp.eq.s32.totalorder %s3232_s11, 0 }
  0xc2   : > { %p511_p1 = pnand %p510_p5, %p509_p3 }
  0xc3   : > { %vm517_vm0 = vcmask (!%p511_p1), 0   ;;  %v2544_v1 = vmov (!%p511_p1), 0.0  }
  0xc4   : > { %514 = sbr.rel (%p511_p1) target bundleno = 203 (0xcb), region = 72  ;;  %515 = vst [vmem:[#allocation2] sm:$0x3] (!%p511_p1), %v2544_v1  ;;  %516 = vst [vmem:[#allocation3] sm:$0x3] (!%p511_p1), %v2544_v1 }
  0xc5   : > { %518 = vst.msk [vmem:[#allocation5] sm:$0x1] (!%p511_p1), %vm517_vm0, %v2544_v1 }
  0xcb PF: > { %s3233_s24 = sld [smem:[#allocation26_spill]] }
  0xd1   : > { %p1528_p6 = scmp.ne.s32.totalorder %s3233_s24, 0 }
  0xd2   : > { %v2920_v2 = vld [vmem:[%s2906_s26 + $0x40] sm:$0xff] (!%p1528_p6)   ;;  %v657_v5 = vlaneseq (!%p1528_p6)  ;;  %v2934_v7 = vld [vmem:[%s2906_s26 + $0x48] sm:$0xff] (!%p1528_p6)   ;;  %v2545_v9 = vmov (!%p1528_p6), 1983009808   ;;  %v2950_v15 = vld [vmem:[%s2906_s26 + $0x50] sm:$0xff] (!%p1528_p6)  }
  0xd3   : > { %521 = sbr.rel (%p1528_p6) target bundleno = 497 (0x1f1), region = 76  ;;  %v2923_v3 = vld [vmem:[%s2906_s26 + $0xc0] sm:$0xff] (!%p1528_p6)   ;;  %1844 = vmatprep.subr.bf16.mxu0 (!%p1528_p6), %v2920_v2  ;;  %v2937_v8 = vld [vmem:[%s2906_s26 + $0xc8] sm:$0xff] (!%p1528_p6)   ;;  %v655_v10 = vunpack.c.l.s4 (!%p1528_p6), %v2545_v9  ;;  %v2953_v16 = vld [vmem:[%s2906_s26 + $0xd0] sm:$0xff] (!%p1528_p6)  }
  0xd4   : > { %v2926_v4 = vld [vmem:[%s2906_s26] sm:$0xff] (!%p1528_p6)   ;;  %1876 = vmatprep.subr.bf16.mxu1 (!%p1528_p6), %v2923_v3  ;;  %v2944_v11 = vld [vmem:[%s2906_s26 + $0x8] sm:$0xff] (!%p1528_p6)   ;;  %v658_v14 = vshrl.u32 (!%p1528_p6), %v657_v5, 7  ;;  %v2960_v17 = vld [vmem:[%s2906_s26 + $0x10] sm:$0xff] (!%p1528_p6)  }
  0xd5   : > { %v2931_v6 = vld [vmem:[%s2906_s26 + $0x80] sm:$0xff] (!%p1528_p6)   ;;  %1846 = vmatpush3.bf16.msra.mxu0 (!%p1528_p6), %v2926_v4  ;;  %v2947_v12 = vld [vmem:[%s2906_s26 + $0x88] sm:$0xff] (!%p1528_p6)   ;;  %v656_v13 = vunpack.c.0.s8 (!%p1528_p6), %v655_v10  ;;  %v2963_v18 = vld [vmem:[%s2906_s26 + $0x90] sm:$0xff] (!%p1528_p6)  }
  0xd6   : > { %1878 = vmatpush3.bf16.msra.mxu1 (!%p1528_p6), %v2931_v6  ;;  %1848 = vmatprep.subr.bf16.mxu0 (!%p1528_p6), %v2934_v7  ;;  %v2966_v20 = vld [vmem:[%s2906_s26 + $0x58] sm:$0xff] (!%p1528_p6)   ;;  %v651_v22 = vld [vmem:[%s2892_s30] sm:$0xff] (!%p1528_p6)  ;;  %v1685_v38 = vld [vmem:[%s2906_s26 + $0x70] sm:$0xff] (!%p1528_p6)  }
  0xd7   : > { %1880 = vmatprep.subr.bf16.mxu1 (!%p1528_p6), %v2937_v8  ;;  %v659_v19 = vsub.s32 (!%p1528_p6), %v656_v13, %v658_v14  ;;  %v2969_v21 = vld [vmem:[%s2906_s26 + $0xd8] sm:$0xff] (!%p1528_p6)   ;;  %v653_v26 = vcombine.high (!%p1528_p6), %v651_v22, %v651_v22  ;;  %v2983_v27 = vld [vmem:[%s2906_s26 + $0x60] sm:$0xff] (!%p1528_p6)   ;;  %v1684_v34 = vld [vmem:[%s2906_s26 + $0x68] sm:$0xff] (!%p1528_p6)  }
  0xd8   : > { %v2977_v23 = vld [vmem:[%s2906_s26 + $0x18] sm:$0xff] (!%p1528_p6)   ;;  %v2986_v28 = vld [vmem:[%s2906_s26 + $0xe0] sm:$0xff] (!%p1528_p6)   ;;  %v1700_v35 = vld [vmem:[%s2906_s26 + $0xe8] sm:$0xff] (!%p1528_p6)  }
  0xd9   : > { %1850 = vmatpush3.bf16.msra.mxu0 (!%p1528_p6), %v2944_v11  ;;  %v2980_v24 = vld [vmem:[%s2906_s26 + $0x98] sm:$0xff] (!%p1528_p6)   ;;  %v660_v25 = vrot.slane (!%p1528_p6), %v651_v22, %v659_v19  ;;  %v667_v30 = vrot.slane (!%p1528_p6), %v653_v26, %v659_v19  ;;  %v1675_v31 = vld [vmem:[%s2906_s26 + $0x20] sm:$0xff] (!%p1528_p6)   ;;  %v1676_v36 = vld [vmem:[%s2906_s26 + $0x28] sm:$0xff] (!%p1528_p6)  }
  0xda   : > { %1882 = vmatpush3.bf16.msra.mxu1 %v2947_v12  ;;  %1852 = vmatprep.subr.bf16.mxu0 %v2950_v15  ;;  %v1691_v32 = vld [vmem:[%s2906_s26 + $0xa0] sm:$0xff]   ;;  %v1692_v37 = vld [vmem:[%s2906_s26 + $0xa8] sm:$0xff]   ;;  %v1701_v39 = vld [vmem:[%s2906_s26 + $0xf0] sm:$0xff]  }
  0xdb   : > { %1884 = vmatprep.subr.bf16.mxu1 %v2953_v16  ;;  %v668_v29 = vcombine.high %v660_v25, %v660_v25  ;;  %v669_v33 = vcombine.high %v667_v30, %v667_v30  ;;  %v817_v40 = vld [vmem:[%s2899_s0] sm:$0xff] }
  0xdc   : > { %v1677_v41 = vld [vmem:[%s2906_s26 + $0x30] sm:$0xff]   ;;  %v1686_v43 = vld [vmem:[%s2906_s26 + $0x78] sm:$0xff]   ;;  %v819_v45 = vcombine.high %v817_v40, %v817_v40  ;;  %v826_v48 = vrot.slane %v817_v40, %v659_v19 }
  0xdd   : > { %1854 = vmatpush3.bf16.msra.mxu0 %v2960_v17  ;;  %738 = vmatprep.mubr.f32.mxu0 %v668_v29  ;;  %v1693_v42 = vld [vmem:[%s2906_s26 + $0xb0] sm:$0xff]   ;;  %v1702_v44 = vld [vmem:[%s2906_s26 + $0xf8] sm:$0xff]  }
  0xde   : > { %1886 = vmatpush3.bf16.msra.mxu1 %v2963_v18  ;;  %1856 = vmatprep.subr.bf16.mxu0 %v2966_v20  ;;  %v1678_v46 = vld [vmem:[%s2906_s26 + $0x38] sm:$0xff]   ;;  %v833_v49 = vrot.slane %v819_v45, %v659_v19  ;;  %v834_v50 = vcombine.high %v826_v48, %v826_v48 }
  0xdf   : > { %1888 = vmatprep.subr.bf16.mxu1 %v2969_v21  ;;  %808 = vmatprep.mubr.f32.mxu1 %v669_v33  ;;  %v1694_v47 = vld [vmem:[%s2906_s26 + $0xb8] sm:$0xff]  }
  0xe0   : > { %v835_v51 = vcombine.high %v833_v49, %v833_v49  ;;  %v650_v58 = vld [vmem:[#allocation2] sm:$0x3] }
  0xe1   : > { %1858 = vmatpush3.bf16.msra.mxu0 %v2977_v23 }
  0xe2   : > { %1890 = vmatpush3.bf16.msra.mxu1 %v2980_v24  ;;  %1860 = vmatprep.subr.bf16.mxu0 %v2983_v27 }
  0xe3   : > { %1892 = vmatprep.subr.bf16.mxu1 %v2986_v28 }
  0xe5   : > { %1862 = vmatpush3.bf16.msra.mxu0 %v1675_v31 }
  0xe6   : > { %1894 = vmatpush3.bf16.msra.mxu1 %v1691_v32  ;;  %1864 = vmatprep.subr.bf16.mxu0 %v1684_v34 }
  0xe7   : > { %1896 = vmatprep.subr.bf16.mxu1 %v1700_v35 }
  0xe9   : > { %1866 = vmatpush3.bf16.msra.mxu0 %v1676_v36 }
  0xea   : > { %1898 = vmatpush3.bf16.msra.mxu1 %v1692_v37  ;;  %1868 = vmatprep.subr.bf16.mxu0 %v1685_v38 }
  0xeb   : > { %1900 = vmatprep.subr.bf16.mxu1 %v1701_v39 }
  0xed   : > { %1870 = vmatpush3.bf16.msra.mxu0 %v1677_v41 }
  0xee   : > { %1902 = vmatpush3.bf16.msra.mxu1 %v1693_v42  ;;  %1872 = vmatprep.subr.bf16.mxu0 %v1686_v43 }
  0xef   : > { %1904 = vmatprep.subr.bf16.mxu1 %v1702_v44 }
  0xf1   : > { %1874 = vmatpush3.bf16.msra.mxu0 %v1678_v46 }
  0xf2   : > { %1906 = vmatpush3.bf16.msra.mxu1 %v1694_v47  ;;  %1908 = vmatprep.subr.bf16.mxu0 %v2920_v2 }
  0xf3   : > { %1940 = vmatprep.subr.bf16.mxu1 %v2923_v3  ;;  %v816_v3 = vld [vmem:[#allocation3] sm:$0x3] }
  0xf4   : > { %739 = vmatmul.mubr.f32.vlgmr.msra.gmra.mrb[0].mxu0 %v660_v25 }
  0xf5   : > { %809 = vmatmul.mubr.f32.vlgmr.msra.gmra.mrb[0].mxu1 %v667_v30  ;;  %1910 = vmatpush3.bf16.msra.mxu0 %v2926_v4 }
  0xf6   : > { %1942 = vmatpush3.bf16.msra.mxu1 %v2931_v6  ;;  %1912 = vmatprep.subr.bf16.mxu0 %v2934_v7 }
  0xf7   : > { %1944 = vmatprep.subr.bf16.mxu1 %v2937_v8  ;;  %904 = vmatprep.mubr.f32.mxu0 %v834_v50 }
  0xf8   : > { %974 = vmatprep.mubr.f32.mxu1 %v835_v51 }
  0xf9   : > { %1914 = vmatpush3.bf16.msra.mxu0 %v2944_v11 }
  0xfa   : > { %1946 = vmatpush3.bf16.msra.mxu1 %v2947_v12  ;;  %1916 = vmatprep.subr.bf16.mxu0 %v2950_v15 }
  0xfb   : > { %1948 = vmatprep.subr.bf16.mxu1 %v2953_v16 }
  0xfd   : > { %1918 = vmatpush3.bf16.msra.mxu0 %v2960_v17 }
  0xfe   : > { %1950 = vmatpush3.bf16.msra.mxu1 %v2963_v18  ;;  %1920 = vmatprep.subr.bf16.mxu0 %v2966_v20 }
  0xff   : > { %1952 = vmatprep.subr.bf16.mxu1 %v2969_v21 }
 0x101   : > { %1922 = vmatpush3.bf16.msra.mxu0 %v2977_v23 }
 0x102   : > { %1954 = vmatpush3.bf16.msra.mxu1 %v2980_v24  ;;  %1924 = vmatprep.subr.bf16.mxu0 %v2983_v27 }
 0x103   : > { %1956 = vmatprep.subr.bf16.mxu1 %v2986_v28 }
 0x105   : > { %1926 = vmatpush3.bf16.msra.mxu0 %v1675_v31 }
 0x106   : > { %1958 = vmatpush3.bf16.msra.mxu1 %v1691_v32  ;;  %1928 = vmatprep.subr.bf16.mxu0 %v1684_v34 }
 0x107   : > { %1960 = vmatprep.subr.bf16.mxu1 %v1700_v35 }
 0x109   : > { %1930 = vmatpush3.bf16.msra.mxu0 %v1676_v36 }
 0x10a   : > { %1962 = vmatpush3.bf16.msra.mxu1 %v1692_v37  ;;  %1932 = vmatprep.subr.bf16.mxu0 %v1685_v38 }
 0x10b   : > { %1964 = vmatprep.subr.bf16.mxu1 %v1701_v39 }
 0x10d   : > { %1934 = vmatpush3.bf16.msra.mxu0 %v1677_v41 }
 0x10e   : > { %1966 = vmatpush3.bf16.msra.mxu1 %v1693_v42  ;;  %1936 = vmatprep.subr.bf16.mxu0 %v1686_v43 }
 0x10f   : > { %1968 = vmatprep.subr.bf16.mxu1 %v1702_v44 }
 0x111   : > { %1938 = vmatpush3.bf16.msra.mxu0 %v1678_v46 }
 0x112   : > { %1970 = vmatpush3.bf16.msra.mxu1 %v1694_v47 }
 0x114   : > { %905 = vmatmul.mubr.f32.vlgmr.msra.gmra.mrb[2].mxu0 %v826_v48 }
 0x115   : > { %975 = vmatmul.mubr.f32.vlgmr.msra.gmra.mrb[2].mxu1 %v833_v49 }
 0x1c7   : > { %v1735_v52 = vpop.f32.mrb[0].mxu0 }
 0x1c8   : > { %v1770_v53 = vpop.f32.mrb[0].mxu1  ;;  %v1736_v54 = vpop.f32.mrb[1].mxu0 }
 0x1c9   : > { %v1771_v55 = vpop.f32.mrb[1].mxu1  ;;  %v1737_v56 = vadd.f32 %v1736_v54, %v1735_v52 }
 0x1ca   : > { %v1772_v57 = vadd.f32 %v1771_v55, %v1770_v53 }
 0x1cc   : > { %v811_v59 = vadd.f32 %v1772_v57, %v1737_v56 }
 0x1ce   : > { %v814_v60 = vadd.f32 %v811_v59, %v650_v58 }
 0x1d0   : > { %815 = vst [vmem:[#allocation2] sm:$0x3] %v814_v60 }
 0x1e7   : > { %v1805_v61 = vpop.f32.mrb[2].mxu0 }
 0x1e8   : > { %v1840_v62 = vpop.f32.mrb[2].mxu1  ;;  %v1806_v63 = vpop.f32.mrb[3].mxu0 }
 0x1e9   : > { %v1841_v0 = vpop.f32.mrb[3].mxu1  ;;  %v1807_v1 = vadd.f32 %v1806_v63, %v1805_v61 }
 0x1ea   : > { %v1842_v2 = vadd.f32 %v1841_v0, %v1840_v62 }
 0x1ec   : > { %v977_v4 = vadd.f32 %v1842_v2, %v1807_v1 }
 0x1ee   : > { %v980_v5 = vadd.f32 %v977_v4, %v816_v3 }
 0x1f0   : > { %981 = vst [vmem:[#allocation3] sm:$0x3] %v980_v5 }
 0x1f1 PF: > { %s3234_s14 = sld [smem:[#allocation25_spill]] }
 0x1f7   : > { %p982_p12 = scmp.eq.s32.totalorder %s3234_s14, 1 }
 0x1f9   : > { %p983_p7 = pnand %p982_p12, %p509_p3 }
 0x1fa   : > { %s3236_s10 = sld [smem:[#allocation33_spill]] (!%p983_p7)  ;;  %v990_v7 = vld [vmem:[#allocation2] sm:$0x3] (!%p983_p7)  ;;  %v998_v9 = vld [vmem:[#allocation3] sm:$0x3] (!%p983_p7)  ;;  %s3237_s2 = sld [smem:[#allocation31_spill]] (!%p983_p7) }
 0x1fb   : > { %986 = sbr.rel (%p983_p7) target bundleno = 687 (0x2af), region = 80  ;;  %v2546_v12 = vmov (!%p983_p7), 0   ;;  %s3238_s9 = sld [smem:[#allocation34_spill]] (!%p983_p7)  ;;  %vm1013_vm3 = vcmask (!%p983_p7), 1041408   ;;  %v2547_v28 = vmov (!%p983_p7), 0.2  }
 0x1fc   : > { %2203 = vset.pattern.permute.xlu1 (!%p983_p7), %v2546_v12  ;;  %2204 = vset.pattern.permute.xlu0 (!%p983_p7), %v2546_v12  ;;  %v1531_v31 = vld [vmem:[#allocation6] ss:$0 sm:$0xff] (!%p983_p7)  ;;  %vm1029_vm5 = vcmask (!%p983_p7), 1024   ;;  %vm1046_vm6 = vcmask (!%p983_p7), 0  }
 0x200   : > { %v1529_v6 = vld [vmem:[%s3236_s10] ss:$0 sm:$0xff] (!%p983_p7) }
 0x201   : > { %v997_v8 = vadd.f32 (!%p983_p7), %v1529_v6, %v990_v7  ;;  %v1048_v10 = vld [vmem:[%s3237_s2] sm:$0x3] (!%p983_p7)  ;;  %v999_v11 = vadd.f32 (!%p983_p7), %v1529_v6, %v998_v9 }
 0x202   : > { %v1530_v13 = vld [vmem:[%s3238_s9] ss:$0 sm:$0xff]  ;;  %1051 = vperm.xlu1 %2203, %v1048_v10   ;;  %v1055_v15 = vsub.f32 1.0, %v1048_v10 }
 0x203   : > { %vm1000_vm1 = vcmp.gt.f32.partialorder %v997_v8, 0.0  ;;  %v1001_v14 = vmul.f32 0.2, %v997_v8  ;;  %vm1003_vm2 = vcmp.gt.f32.partialorder %v999_v11, 0.0  ;;  %v1004_v16 = vmul.f32 0.2, %v999_v11 }
 0x205   : > { %v1002_v17 = vsel %vm1000_vm1, %v997_v8, %v1001_v14  ;;  %v1005_v19 = vsel %vm1003_vm2, %v999_v11, %v1004_v16 }
 0x206   : > { %v1012_v18 = vmul.f32 %v1530_v13, %v1002_v17  ;;  %v1024_v20 = vmul.f32 %v1530_v13, %v1005_v19  ;;  %1058 = vperm.xlu1 %2203, %v1055_v15  }
 0x208   : > { %v1014_v21 = vsel %vm1013_vm3, %v1012_v18, 0.0  ;;  %v1025_v22 = vsel %vm1013_vm3, %v1024_v20, 0.0 }
 0x209   : > { %1015 = vadd.xlane.f32.xlu0 %v1014_v21 }
 0x20d   : > { %1026 = vadd.xlane.f32.xlu0 %v1025_v22 }
 0x281   : > { %v1052_v23 = vpop.permute.xlu1 %1051 }
 0x282   : > { %v1054_v24 = vmul.f32 %v1052_v23, %v997_v8 }
 0x285   : > { %v1059_v25 = vpop.permute.xlu1 %1058 }
 0x286   : > { %v1061_v26 = vmul.f32 %v1059_v25, %v999_v11 }
 0x288   : > { %v1062_v27 = vadd.f32 %v1061_v26, %v1054_v24 }
 0x28a   : > { %vm1063_vm4 = vcmp.gt.f32.partialorder %v1062_v27, 0.0 }
 0x28b   : > { %v1064_v29 = vsel %vm1063_vm4, 1.0, %v2547_v28 }
 0x28c   : > { %v1065_v30 = vmul.f32 %v1530_v13, %v1064_v29 }
 0x28e   : > { %1066 = vst [vmem:[#allocation4] sm:$0x3] %v1065_v30 }
 0x296   : > { %v1016_v32 = vpop.xlane.xlu0 %1015 }
 0x297   : > { %v1023_v33 = vadd.f32 %v1531_v31, %v1016_v32 }
 0x299   : > { %v1030_v34 = vsel %vm1029_vm5, %v1023_v33, 0.0 }
 0x29a   : > { %v1031_v35 = vrot.slane %v1030_v34, 4  ;;  %v1027_v36 = vpop.xlane.xlu0 %1026 }
 0x29b   : > { %v1028_v37 = vadd.f32 %v1531_v31, %v1027_v36 }
 0x29c   : > { %v1032_v38 = vadd.f32 %v1031_v35, %v1030_v34 }
 0x29d   : > { %v1037_v39 = vsel %vm1029_vm5, %v1028_v37, 0.0 }
 0x29e   : > { %v1033_v40 = vrot.slane %v1032_v38, 2  ;;  %v1038_v41 = vrot.slane %v1037_v39, 4 }
 0x2a0   : > { %v1034_v42 = vadd.f32 %v1033_v40, %v1032_v38  ;;  %v1039_v43 = vadd.f32 %v1038_v41, %v1037_v39 }
 0x2a2   : > { %v1040_v44 = vrot.slane %v1039_v43, 2  ;;  %v1035_v45 = vrot.slane %v1034_v42, 1 }
 0x2a4   : > { %v1041_v46 = vadd.f32 %v1040_v44, %v1039_v43  ;;  %v1036_v48 = vadd.f32 %v1035_v45, %v1034_v42 }
 0x2a6   : > { %v1042_v47 = vrot.slane %v1041_v46, 1 }
 0x2a8   : > { %v1043_v49 = vadd.f32 %v1042_v47, %v1041_v46 }
 0x2aa   : > { %v1044_v50 = vsub.f32 %v1036_v48, %v1043_v49 }
 0x2ac   : > { %v1045_v51 = vmul.f32 0.5, %v1044_v50 }
 0x2ae   : > { %1047 = vst.msk [vmem:[#allocation15] sm:$0x1] %vm1046_vm6, %v1045_v51 }
 0x2af PF: > { %s3239_s6 = sld [smem:[#allocation26_spill]] }
 0x2b5   : > { %p1067_p2 = scmp.eq.s32.totalorder %s3239_s6, 1  ;;  %p1532_p0 = scmp.ne.s32.totalorder %s3239_s6, 1 }
 0x2b6   : > { %v2205_v52 = vld [vmem:[%s2908_s21 + $0x4] ss:$16 sps:$4 sm:$0xff] (!%p1532_p0)   ;;  %v2207_v53 = vld [vmem:[%s2908_s21] ss:$16 sps:$4 sm:$0xff] (!%p1532_p0)   ;;  %v2548_v54 = vmov (!%p1532_p0), 0.0   ;;  %vm1315_vm7 = vcmask (!%p1532_p0), 1041408  }
 0x2b7   : > { %1070 = sbr.rel (%p1532_p0) target bundleno = 1108 (0x454), region = 84  ;;  %1232 = vmatprep.mubr.f32.mxu0 (!%p1532_p0), %v2548_v54  ;;  %1303 = vmatprep.mubr.f32.mxu1 (!%p1532_p0), %v2548_v54  ;;  %v2208_v55 = vld [vmem:[%s2908_s21 + $0xc] ss:$16 sps:$4 sm:$0xff] (!%p1532_p0)   ;;  %v2210_v56 = vld [vmem:[%s2908_s21 + $0x8] ss:$16 sps:$4 sm:$0xff] (!%p1532_p0)   ;;  %vm1333_vm8 = vcmask (!%p1532_p0), 0  }
 0x2b8   : > { %1972 = vmatprep.subr.bf16.mxu0 (!%p1532_p0), %v2205_v52  ;;  %v2211_v57 = vld [vmem:[%s2908_s21 + $0x24] ss:$16 sps:$4 sm:$0xff] (!%p1532_p0)   ;;  %v2213_v58 = vld [vmem:[%s2908_s21 + $0x20] ss:$16 sps:$4 sm:$0xff] (!%p1532_p0)   ;;  %2004 = vmatprep.subr.bf16.mxu1 (!%p1532_p0), %v2208_v55  ;;  %v2214_v59 = vld [vmem:[%s2908_s21 + $0x2c] ss:$16 sps:$4 sm:$0xff] (!%p1532_p0)  }
 0x2b9   : > { %1974 = vmatpush1.bf16.msra.mxu0 (!%p1532_p0), %v2207_v53  ;;  %2006 = vmatpush1.bf16.msra.mxu1 (!%p1532_p0), %v2210_v56  ;;  %v2216_v60 = vld [vmem:[%s2908_s21 + $0x28] ss:$16 sps:$4 sm:$0xff] (!%p1532_p0)   ;;  %v2217_v61 = vld [vmem:[%s2908_s21 + $0x44] ss:$16 sps:$4 sm:$0xff] (!%p1532_p0)   ;;  %v2219_v62 = vld [vmem:[%s2908_s21 + $0x40] ss:$16 sps:$4 sm:$0xff] (!%p1532_p0)  }
 0x2ba   : > { %1976 = vmatprep.subr.bf16.mxu0 (!%p1532_p0), %v2211_v57  ;;  %2008 = vmatprep.subr.bf16.mxu1 (!%p1532_p0), %v2214_v59  ;;  %v2220_v63 = vld [vmem:[%s2908_s21 + $0x4c] ss:$16 sps:$4 sm:$0xff] (!%p1532_p0)   ;;  %v2223_v0 = vld [vmem:[%s2908_s21 + $0x64] ss:$16 sps:$4 sm:$0xff] (!%p1532_p0)   ;;  %v2222_v1 = vld [vmem:[%s2908_s21 + $0x48] ss:$16 sps:$4 sm:$0xff] (!%p1532_p0)  }
 0x2bb   : > { %v2226_v2 = vld [vmem:[%s2908_s21 + $0x6c] ss:$16 sps:$4 sm:$0xff] (!%p1532_p0)   ;;  %v2225_v3 = vld [vmem:[%s2908_s21 + $0x60] ss:$16 sps:$4 sm:$0xff] (!%p1532_p0)   ;;  %v2229_v4 = vld [vmem:[%s2908_s21 + $0x84] ss:$16 sps:$4 sm:$0xff] (!%p1532_p0)  }
 0x2bc   : > { %v2228_v5 = vld [vmem:[%s2908_s21 + $0x68] ss:$16 sps:$4 sm:$0xff] (!%p1532_p0)   ;;  %v2232_v6 = vld [vmem:[%s2908_s21 + $0x8c] ss:$16 sps:$4 sm:$0xff] (!%p1532_p0)   ;;  %v2231_v7 = vld [vmem:[%s2908_s21 + $0x80] ss:$16 sps:$4 sm:$0xff] (!%p1532_p0)  }
 0x2bd   : > { %1978 = vmatpush1.bf16.msra.mxu0 (!%p1532_p0), %v2213_v58  ;;  %2010 = vmatpush1.bf16.msra.mxu1 (!%p1532_p0), %v2216_v60  ;;  %v2235_v8 = vld [vmem:[%s2908_s21 + $0xa4] ss:$16 sps:$4 sm:$0xff] (!%p1532_p0)   ;;  %v2234_v9 = vld [vmem:[%s2908_s21 + $0x88] ss:$16 sps:$4 sm:$0xff] (!%p1532_p0)   ;;  %v2238_v10 = vld [vmem:[%s2908_s21 + $0xac] ss:$16 sps:$4 sm:$0xff] (!%p1532_p0)  }
 0x2be   : > { %1980 = vmatprep.subr.bf16.mxu0 %v2217_v61  ;;  %2012 = vmatprep.subr.bf16.mxu1 %v2220_v63  ;;  %v2237_v11 = vld [vmem:[%s2908_s21 + $0xa0] ss:$16 sps:$4 sm:$0xff]   ;;  %v2241_v12 = vld [vmem:[%s2908_s21 + $0xc4] ss:$16 sps:$4 sm:$0xff]   ;;  %v2240_v13 = vld [vmem:[%s2908_s21 + $0xa8] ss:$16 sps:$4 sm:$0xff]  }
 0x2bf   : > { %v2244_v14 = vld [vmem:[%s2908_s21 + $0xcc] ss:$16 sps:$4 sm:$0xff]   ;;  %v2243_v15 = vld [vmem:[%s2908_s21 + $0xc0] ss:$16 sps:$4 sm:$0xff]   ;;  %v2247_v16 = vld [vmem:[%s2908_s21 + $0xe4] ss:$16 sps:$4 sm:$0xff]  }
 0x2c0   : > { %v2246_v17 = vld [vmem:[%s2908_s21 + $0xc8] ss:$16 sps:$4 sm:$0xff]   ;;  %v2250_v18 = vld [vmem:[%s2908_s21 + $0xec] ss:$16 sps:$4 sm:$0xff]   ;;  %v2249_v19 = vld [vmem:[%s2908_s21 + $0xe0] ss:$16 sps:$4 sm:$0xff]  }
 0x2c1   : > { %1982 = vmatpush1.bf16.msra.mxu0 %v2219_v62  ;;  %2014 = vmatpush1.bf16.msra.mxu1 %v2222_v1  ;;  %v2252_v20 = vld [vmem:[%s2908_s21 + $0xe8] ss:$16 sps:$4 sm:$0xff]   ;;  %v1071_v21 = vld [vmem:[#allocation4] sm:$0x3]  ;;  %v1310_v44 = vld [vmem:[#allocation5] sm:$0x1] }
 0x2c2   : > { %1984 = vmatprep.subr.bf16.mxu0 %v2223_v0  ;;  %2016 = vmatprep.subr.bf16.mxu1 %v2226_v2 }
 0x2c5   : > { %1986 = vmatpush1.bf16.msra.mxu0 %v2225_v3  ;;  %2018 = vmatpush1.bf16.msra.mxu1 %v2228_v5 }
 0x2c6   : > { %1988 = vmatprep.subr.bf16.mxu0 %v2229_v4  ;;  %2020 = vmatprep.subr.bf16.mxu1 %v2232_v6 }
 0x2c9   : > { %1990 = vmatpush1.bf16.msra.mxu0 %v2231_v7  ;;  %2022 = vmatpush1.bf16.msra.mxu1 %v2234_v9 }
 0x2ca   : > { %1992 = vmatprep.subr.bf16.mxu0 %v2235_v8  ;;  %2024 = vmatprep.subr.bf16.mxu1 %v2238_v10 }
 0x2cd   : > { %1994 = vmatpush1.bf16.msra.mxu0 %v2237_v11  ;;  %2026 = vmatpush1.bf16.msra.mxu1 %v2240_v13 }
 0x2ce   : > { %1996 = vmatprep.subr.bf16.mxu0 %v2241_v12  ;;  %2028 = vmatprep.subr.bf16.mxu1 %v2244_v14 }
 0x2d1   : > { %1998 = vmatpush1.bf16.msra.mxu0 %v2243_v15  ;;  %2030 = vmatpush1.bf16.msra.mxu1 %v2246_v17 }
 0x2d2   : > { %2000 = vmatprep.subr.bf16.mxu0 %v2247_v16  ;;  %2032 = vmatprep.subr.bf16.mxu1 %v2250_v18 }
 0x2d5   : > { %2002 = vmatpush1.bf16.msra.mxu0 %v2249_v19  ;;  %2034 = vmatpush1.bf16.msra.mxu1 %v2252_v20 }
 0x2d8   : > { %1233 = vmatmul.mubr.f32.vlgmr.msra.gmra.mrb[0].mxu0 %v1071_v21  ;;  %1304 = vmatmul.mubr.f32.vlgmr.msra.gmra.mrb[0].mxu1 %v1071_v21 }
 0x3ab   : > { %v1234_v22 = vpop.f32.mrb[0].mxu0  ;;  %v1305_v26 = vpop.f32.mrb[0].mxu1 }
 0x3ac   : > { %v1311_v23 = vmul.f32 %v1234_v22, %v1234_v22  ;;  %v1236_v24 = vpop.f32.mrb[1].mxu0  ;;  %v1313_v28 = vmul.f32 %v1305_v26, %v1305_v26  ;;  %v1307_v29 = vpop.f32.mrb[1].mxu1 }
 0x3ad   : > { %v1312_v25 = vmul.f32 %v1236_v24, %v1236_v24  ;;  %v1314_v31 = vmul.f32 %v1307_v29, %v1307_v29 }
 0x3ae   : > { %v1316_v27 = vsel %vm1315_vm7, %v1311_v23, 0.0  ;;  %v1319_v33 = vsel %vm1315_vm7, %v1313_v28, 0.0 }
 0x3af   : > { %v1317_v30 = vsel %vm1315_vm7, %v1312_v25, 0.0  ;;  %v1321_v35 = vsel %vm1315_vm7, %v1314_v31, 0.0 }
 0x3b0   : > { %v1318_v32 = vadd.f32 %v1317_v30, %v1316_v27 }
 0x3b2   : > { %v1320_v34 = vadd.f32 %v1319_v33, %v1318_v32 }
 0x3b4   : > { %v1322_v36 = vadd.f32 %v1321_v35, %v1320_v34 }
 0x3b6   : > { %1323 = vadd.xlane.f32.xlu0 %v1322_v36 }
 0x443   : > { %v1324_v37 = vpop.xlane.xlu0 %1323 }
 0x444   : > { %v1325_v38 = vsel %vm1315_vm7, %v1324_v37, 0.0 }
 0x445   : > { %v1326_v39 = vrot.slane %v1325_v38, 4 }
 0x447   : > { %v1327_v40 = vadd.f32 %v1326_v39, %v1325_v38 }
 0x449   : > { %v1328_v41 = vrot.slane %v1327_v40, 2 }
 0x44b   : > { %v1329_v42 = vadd.f32 %v1328_v41, %v1327_v40 }
 0x44d   : > { %v1330_v43 = vrot.slane %v1329_v42, 1 }
 0x44f   : > { %v1331_v45 = vadd.f32 %v1330_v43, %v1329_v42 }
 0x451   : > { %v1332_v46 = vadd.f32 %v1331_v45, %v1310_v44 }
 0x453   : > { %1334 = vst.msk [vmem:[#allocation5] sm:$0x1] %vm1333_vm8, %v1332_v46 }
 0x454 PF: > { %p1335_p13 = pnand %p1067_p2, %p982_p12 }
 0x455   : > { %vm1349_vm11 = vcmask (!%p1335_p13), 0  }
 0x456   : > { %1338 = sbr.rel (%p1335_p13) target bundleno = 1135 (0x46f), region = 88 }
 0x45a   : > { %v1339_v47 = vld [vmem:[#allocation5] sm:$0x1] (!%p1335_p13) }
 0x45b   : > { %2253 = vrsqrt.f32 (!%p1335_p13), %v1339_v47  ;;  %vm1342_vm9 = vcmp.eq.f32.partialorder (!%p1335_p13), %v1339_v47, inf  ;;  %v1345_v49 = vand.u32 (!%p1335_p13), 2147483648, %v1339_v47  ;;  %vm1344_vm10 = vcmp.eq.f32.partialorder (!%p1335_p13), %v1339_v47, 0.0 }
 0x465   : > { %v2254_v48 = vpop.eup %2253 }
 0x466   : > { %v1341_v50 = vmul.f32 %v2254_v48, %v1339_v47 }
 0x468   : > { %v1343_v51 = vsel %vm1342_vm9, %v1339_v47, %v1341_v50 }
 0x469   : > { %v1346_v52 = vsel %vm1344_vm10, %v1345_v49, %v1343_v51 }
 0x46a   : > { %v1533_v53 = vadd.f32 -1.0, %v1346_v52 }
 0x46c   : > { %v1348_v54 = vmul.f32 %v1533_v53, %v1533_v53 }
 0x46e   : > { %1350 = vst.msk [vmem:[#allocation16] sm:$0x1] %vm1349_vm11, %v1348_v54 }
 0x46f PF: > { %s3242_s20 = sld [smem:[#allocation28_spill]]  ;;  %s2549_s26 = smov [#allocation15]  }
 0x470   : > { %s1358_s27 = sshll.u32 %s2549_s26, 4  ;;  %s2550_s21 = smov [#allocation16]   ;;  %s1359_s27 = int_to_ptr.vmem [resolvable:$true] %s1358_s27 }
 0x471   : > { %s1369_s16 = sshll.u32 %s2550_s21, 4  ;;  %s2375_s11 = scalar_lea.vmem %s1359_s27, 16  ;;  %s3083_s16 = int_to_ptr.vmem [resolvable:$true] %s1369_s16 }
 0x472   : > { %p2376_p11 = scmp.ne.s32.totalorder %s1359_s27, %s2375_s11  ;;  %s2381_s24 = scalar_lea.vmem %s1359_s27, 32 }
 0x473   : > { %p2382_p8 = scmp.lt.s32.totalorder %s1359_s27, %s1359_s27  ;;  %p2383_p3 = scmp.lt.s32.totalorder %s2381_s24, %s2375_s11 }
 0x475   : > { %p2097_p10 = scmp.eq.s32.totalorder %s3242_s20, 3  ;;  %p2384_p5 = por %p2383_p3, %p2382_p8 }
 0x477   : > { %p2377_p9 = pnand %p2376_p11, %p2097_p10 }
 0x479   : > { %p2378_p4 = pneg %p2377_p9 }
 0x47b   : > { %p2385_p1 = pnand %p2384_p5, %p2378_p4 }
 0x47d   : > { %2388 = shalt.err (!%p2385_p1)
}
 0x47e   : > { %s3243_s12 = sld [smem:[#allocation35_spill]] }
 0x484   : > { %s3244_s5 = smov %s3243_s12  ;;  %s2389_s10 = scalar_lea.hbm %s3243_s12, 16 }
 0x485   : > { %p2390_p6 = scmp.ne.s32.totalorder %s3244_s5, %s2389_s10  ;;  %p2395_p2 = scmp.lt.u32.totalorder %s2389_s10, %s3244_s5 }
 0x487   : > { %p2391_p12 = pnand %p2390_p6, %p2097_p10 }
 0x489   : > { %p2392_p7 = pneg %p2391_p12 }
 0x48b   : > { %p2397_p0 = pnand %p2395_p2, %p2392_p7 }
 0x48d   : > { %2400 = shalt.err (!%p2397_p0)
}
 0x48e   : > { %2076 = dma.vmem_to_hbm [thread:$0]  (%p2097_p10), %s1359_s27, 16, %s3244_s5, [#allocation9]  }
 0x48f   : > { %s2401_s6 = scalar_lea.vmem %s3083_s16, 16  ;;  %s2407_s25 = scalar_lea.vmem %s3083_s16, 32 }
 0x490   : > { %p2402_p13 = scmp.ne.s32.totalorder %s3083_s16, %s2401_s6  ;;  %p2408_p4 = scmp.lt.s32.totalorder %s3083_s16, %s3083_s16 }
 0x491   : > { %p2409_p8 = scmp.lt.s32.totalorder %s2407_s25, %s2401_s6 }
 0x492   : > { %p2403_p11 = pnand %p2402_p13, %p2097_p10 }
 0x493   : > { %p2410_p3 = por %p2409_p8, %p2408_p4 }
 0x494   : > { %p2404_p9 = pneg %p2403_p11 }
 0x496   : > { %p2411_p5 = pnand %p2410_p3, %p2404_p9 }
 0x498   : > { %2414 = shalt.err (!%p2411_p5)
}
 0x499   : > { %s3245_s21 = sld [smem:[#allocation36_spill]] }
 0x49f   : > { %s2415_s11 = scalar_lea.hbm %s3245_s21, 16 }
 0x4a0   : > { %p2416_p1 = scmp.ne.s32.totalorder %s3245_s21, %s2415_s11  ;;  %p2421_p7 = scmp.lt.u32.totalorder %s2415_s11, %s3245_s21 }
 0x4a2   : > { %p2417_p6 = pnand %p2416_p1, %p2097_p10 }
 0x4a4   : > { %p2418_p12 = pneg %p2417_p6 }
 0x4a6   : > { %p2423_p2 = pnand %p2421_p7, %p2418_p12 }
 0x4a8   : > { %2426 = shalt.err (!%p2423_p2)
}
 0x4a9   : > { %2078 = dma.vmem_to_hbm [thread:$0]  (%p2097_p10), %s3083_s16, 16, %s3245_s21, [#allocation17]  }
 0x4aa   : > { %2484 = dma.done.wait (%p2097_p10), [#allocation9], 16  }
 0x4ab   : > { %2486 = vsyncadd (%p2097_p10), [#allocation9], 4294967280 }
 0x4ac   : > { %2488 = dma.done.wait (%p2097_p10), [#allocation17], 16  }
 0x4ad   : > { %2490 = vsyncadd (%p2097_p10), [#allocation17], 4294967280 }
 0x4ae PF: > { %s3246_s30 = sld [smem:[#allocation27_spill]]  ;;  %s3247_s11 = sld [smem:[#allocation23_spill]] }
 0x4af   : > { %s3248_s16 = sld [smem:[#allocation24_spill]]  ;;  %s3249_s7 = sld [smem:[#allocation29_spill]] }
 0x4b0   : > { %s3250_s12 = smov %s2501_s13  ;;  %s3251_s13 = smov %s2852_s29 }
 0x4b1   : > { %s3252_s14 = smov %s2509_s15  ;;  %s3255_s17 = smov %s2529_s19 }
 0x4b2   : > { %s3257_s19 = smov %s3263_s23 }
 0x4b4   : > { %s33_s20 = sadd.s32 1, %s3246_s30  }
 0x4b5   : > { %p30_p0 = scmp.ge.s32.totalorder %s33_s20, 6   ;;  %s3253_s15 = smov %s3248_s16 }
 0x4b6   : > { %s3254_s16 = smov %s2525_s18  ;;  %s3256_s18 = smov %s3259_s22 }
 0x4b7   :  { %32 = sbr.rel (!%p30_p0) target bundleno = 20 (0x14), region = 154 }
 0x4be   :  { %1386 = vsyncpa [#allocation8], 1 }
 0x4bf   :  { %1388 = vsyncpa [#allocation8 + $0x1], 1 }
 0x4c0   :  { %1389 = vsyncpa [#allocation11], 1 }
 0x4c1   :  { %1391 = vsyncpa [#allocation11 + $0x1], 1 }
 0x4c2   :  { %1392 = vsyncpa [#allocation14], 1 }
 0x4c3   :  { %1394 = vsyncpa [#allocation14 + $0x1], 1 }
 0x4c4   :  { %1395 = vsyncpa [#allocation9], 1 }
 0x4c5   :  { %1397 = vsyncpa [#allocation9 + $0x1], 1 }
 0x4c6   :  { %1398 = vsyncpa [#allocation17], 1 }

</bundles_post_ra>
